<compile_context>
chip_gen: v6e
topology: v6e:2x2x1
jax: 0.10.0
libtpu: 0.0.40
codegen_flags: <defaults>
</compile_context>

<pallas_src>
import functools

import jax
import jax.numpy as jnp
import numpy as np
from jax import lax
from jax.experimental import pallas as pl
from jax.experimental.pallas import tpu as pltpu


def _round_up(x, m):
    return (x + m - 1) // m * m


# ---------------------------------------------------------------------------
# Host-side packing: banded conv-as-matmul weights + pooling selection matrices
# ---------------------------------------------------------------------------
def _band_conv0(w_oihw, W, k_pad):
    """(Cout,Cin,3,3) -> (3, k_pad, W*Cout).

    Input row layout (channel-major): column c*W + wi holds pixel wi of input
    channel c (no explicit width halo: out-of-range taps are omitted).
    Output lanes are pixel-major: wo*Cout + co.
    """
    w = np.asarray(w_oihw, np.float32)
    cout, cin = w.shape[0], w.shape[1]
    band = np.zeros((3, k_pad, W * cout), np.float32)
    for kh in range(3):
        for kw in range(3):
            blk = w[:, :, kh, kw].T                       # (Cin, Cout)
            for wo in range(W):
                wi = wo + kw - 1
                if 0 <= wi < W:
                    rows = np.arange(cin) * W + wi
                    band[kh, rows, wo * cout:(wo + 1) * cout] = blk
    return jnp.asarray(band)


def _band_res(w_oihw, Wo, lanes):
    """(C,C,3,3) -> (3, lanes, lanes) for the residual convs.

    Input AND output use the 128-lane padded pixel-major layout p*C + c with
    valid pixels 0..Wo-1; rows/cols belonging to pad pixels stay zero, so pad
    lanes never contaminate the result.
    """
    w = np.asarray(w_oihw, np.float32)
    cout, cin = w.shape[0], w.shape[1]
    band = np.zeros((3, lanes, lanes), np.float32)
    for kh in range(3):
        for kw in range(3):
            blk = w[:, :, kh, kw].T                       # (Cin, Cout)
            for wo in range(Wo):
                wi = wo + kw - 1
                if 0 <= wi < Wo:
                    band[kh, wi * cin:(wi + 1) * cin,
                         wo * cout:(wo + 1) * cout] = blk
    return jnp.asarray(band)


def _pool_select(W, Wo, Cout, lanes):
    """0/1 matrices so that max_dw(rowmax @ sel[dw]) is the column direction of
    the 3x3/s2 max-pool, emitted directly in the padded residual layout."""
    sel = np.zeros((3, W * Cout, lanes), np.float32)
    eye = np.eye(Cout, dtype=np.float32)
    for dw in range(3):
        for j in range(Wo):
            src = 2 * j + dw
            sel[dw, src * Cout:(src + 1) * Cout, j * Cout:(j + 1) * Cout] = eye
    return jnp.asarray(sel)


def _bias_conv0(b, W):
    return jnp.asarray(np.tile(np.asarray(b, np.float32), W))[None, :]


def _bias_res(b, Wo, lanes):
    b = np.asarray(b, np.float32)
    row = np.zeros((lanes,), np.float32)
    row[:Wo * b.shape[0]] = np.tile(b, Wo)
    return jnp.asarray(row)[None, :]


def prepare_params(params, H, W):
    """Pack PyTorch-layout (OIHW + bias) ConvSequence weights for the kernel."""
    cout = int(np.asarray(params["b0"]).shape[0])
    cin = int(np.asarray(params["w0"]).shape[1])
    Wo = (W - 3) // 2 + 1
    k0 = _round_up(cin * W, 128)           # conv0 K, lane padded
    lanes = _round_up(Wo * cout, 128)      # residual-stage lane width
    prep = {
        "w0": _band_conv0(params["w0"], W, k0),
        "b0": _bias_conv0(params["b0"], W),
        "sel": _pool_select(W, Wo, cout, lanes),
    }
    for name in ("1a", "1b", "2a", "2b"):
        prep["w" + name] = _band_res(params["w" + name], Wo, lanes)
        prep["b" + name] = _bias_res(params["b" + name], Wo, lanes)
    return prep


# ---------------------------------------------------------------------------
# Fused kernel: one grid step == one tile of B images stacked along rows.
# ---------------------------------------------------------------------------
def _conv_sequence_kernel(x_ref, w0_ref, b0_ref, sel_ref, mask_ref,
                          w1a_ref, b1a_ref, w1b_ref, b1b_ref,
                          w2a_ref, b2a_ref, w2b_ref, b2b_ref,
                          out_ref,
                          o0_ref, res_ref,
                          *, hp0, hp, ho, n_img):
    f32 = jnp.float32
    m0 = n_img * hp0 - 2         # stacked conv0 output rows
    hs = n_img * hp              # stacked, per-image-padded residual rows
    p = hs - 2                   # rows carried through pooling / residuals

    def conv3(src_ref, m, w_ref, b_row):
        # 3 accumulating MXU matmuls (one per kernel row), K = lanes.
        acc = jnp.dot(src_ref[0:m, :], w_ref[0], preferred_element_type=f32)
        acc = acc + jnp.dot(src_ref[1:m + 1, :], w_ref[1],
                            preferred_element_type=f32)
        acc = acc + jnp.dot(src_ref[2:m + 2, :], w_ref[2],
                            preferred_element_type=f32)
        return acc + b_row

    # ---- conv0 (bias, no activation) ---------------------------------------
    o0_ref[...] = conv3(x_ref, m0, w0_ref, b0_ref[...])

    # ---- 3x3 / stride-2 max-pool, fully vectorised --------------------------
    # row direction: stride-2 sublane reads + two maxima
    rmax = jnp.maximum(
        jnp.maximum(o0_ref[pl.ds(0, p, 2), :], o0_ref[pl.ds(1, p, 2), :]),
        o0_ref[pl.ds(2, p, 2), :])
    # column direction + even-pixel selection: 3 matmuls on the idle MXU,
    # result lands directly in the 128-lane padded residual layout.
    pooled = jnp.maximum(
        jnp.maximum(jnp.dot(rmax, sel_ref[0], preferred_element_type=f32),
                    jnp.dot(rmax, sel_ref[1], preferred_element_type=f32)),
        jnp.dot(rmax, sel_ref[2], preferred_element_type=f32))

    mask = mask_ref[...]                 # (p, 1): 1 on data rows, 0 on halos
    h = pooled * mask                    # zero the per-image halo rows

    # ---- two residual blocks; every intermediate stays in VMEM --------------
    # Re-zeroed every step (multicore-safe; ~2 vregs).  Only rows 0 and hs-1
    # rely on it afterwards: interior halo rows are re-zeroed by `mask`.
    res_ref[...] = jnp.zeros_like(res_ref)
    for wa, ba, wb, bb in ((w1a_ref, b1a_ref, w1b_ref, b1b_ref),
                           (w2a_ref, b2a_ref, w2b_ref, b2b_ref)):
        res_ref[1:hs - 1, :] = jnp.maximum(h, 0.0)                    # relu(x)
        t = jnp.maximum(conv3(res_ref, p, wa, ba[...]), 0.0) * mask   # relu(conv1)
        res_ref[1:hs - 1, :] = t
        t = jnp.maximum(conv3(res_ref, p, wb, bb[...]), 0.0) * mask   # relu(conv2)
        h = h + t                                                     # skip add

    out_ref[...] = h                     # full-lane (p, 128) store


# ---------------------------------------------------------------------------
# Wrapper
# ---------------------------------------------------------------------------
def _const_spec(arr):
    shape = arr.shape
    return pl.BlockSpec(shape, lambda n, _d=len(shape): (0,) * _d)


def _pick_batch_tile(N, hp0):
    """Images stacked per grid step: fill MXU rows, keep >=2 grid steps."""
    fill = max(1, 256 // hp0)               # stacked conv0 M ~<= 256
    b = max(1, min(N, fill, max(1, (N + 1) // 2)))
    t = -(-N // b)
    return -(-N // t)                       # rebalance: minimise batch padding


def conv_sequence(x_nchw, prep, *, batch_tile=None):
    """x_nchw: (N, Cin, H, W) f32; prep: output of prepare_params. -> NCHW."""
    N, Cin, H, W = x_nchw.shape
    assert H % 2 == 0 and H >= 4 and W >= 4, "kernel assumes even H"
    Cout = prep["b0"].shape[1] // W
    Ho = (H - 3) // 2 + 1
    Wo = (W - 3) // 2 + 1
    hp0 = H + 2                      # padded rows / image, conv0 stage
    hp = Ho + 2                      # padded rows / image, residual stage
    assert hp0 == 2 * hp             # holds for every even H
    k0 = prep["w0"].shape[1]         # conv0 K (lane padded, 128-multiple)
    l0 = prep["w0"].shape[2]         # conv0 output lanes (W*Cout)
    lanes = prep["w1a"].shape[1]     # residual-stage lane width (128-multiple)

    B = batch_tile or _pick_batch_tile(N, hp0)
    T = -(-N // B)                   # grid steps
    Np = T * B
    m0 = B * hp0 - 2
    hs = B * hp
    p = hs - 2

    # ---- conv0 input packing: pure XLA, fused, hidden behind the input DMA --
    xp = x_nchw
    if Np != N:
        xp = jnp.concatenate(
            [xp, jnp.zeros((Np - N, Cin, H, W), xp.dtype)], axis=0)
    xp = jnp.pad(xp, ((0, 0), (0, 0), (1, 1), (0, 0)))         # H halo rows
    xp = jnp.transpose(xp, (0, 2, 1, 3)).reshape(Np, hp0, Cin * W)
    xp = jnp.pad(xp, ((0, 0), (0, 0), (0, k0 - Cin * W)))      # lane pad -> k0
    xp = xp.reshape(T, B * hp0, k0)

    # row-validity mask for the stacked residual layout (halo rows -> 0)
    mask = jnp.asarray(((np.arange(p) % hp) < Ho).astype(np.float32)[:, None])

    const_args = [prep["w0"], prep["b0"], prep["sel"], mask,
                  prep["w1a"], prep["b1a"], prep["w1b"], prep["b1b"],
                  prep["w2a"], prep["b2a"], prep["w2b"], prep["b2b"]]

    kernel = functools.partial(_conv_sequence_kernel,
                               hp0=hp0, hp=hp, ho=Ho, n_img=B)

    out_tiles = pl.pallas_call(
        kernel,
        out_shape=jax.ShapeDtypeStruct((T, p, lanes), jnp.float32),
        grid=(T,),
        in_specs=[pl.BlockSpec((None, B * hp0, k0), lambda n: (n, 0, 0))]
                 + [_const_spec(a) for a in const_args],
        out_specs=pl.BlockSpec((None, p, lanes), lambda n: (n, 0, 0)),
        scratch_shapes=[
            pltpu.VMEM((m0, l0), jnp.float32),      # conv0 output (pre-pool)
            pltpu.VMEM((hs, lanes), jnp.float32),   # padded residual activations
        ],
        compiler_params=pltpu.CompilerParams(
            dimension_semantics=("parallel",),
            vmem_limit_bytes=32 * 1024 * 1024),
    )(xp, *const_args)

    # ---- tiny XLA epilogue: pick per-image data rows, drop lane padding -----
    row_idx = (np.arange(B)[:, None] * hp + np.arange(Ho)[None, :]).reshape(-1)
    out = jnp.take(out_tiles, jnp.asarray(row_idx), axis=1)   # (T, B*Ho, lanes)
    out = out.reshape(Np, Ho, lanes)[:N, :, :Wo * Cout]
    out = out.reshape(N, Ho, Wo, Cout)
    return jnp.transpose(out, (0, 3, 1, 2))


# ---------------------------------------------------------------------------
# Pure-JAX reference (independent of the kernel's weight packing)
# ---------------------------------------------------------------------------
def _ref_forward(x_nchw, p):
    def conv(x, w, b):
        y = lax.conv_general_dilated(x, w, (1, 1), "SAME",
                                     dimension_numbers=("NCHW", "OIHW", "NCHW"))
        return y + b.reshape(1, -1, 1, 1)

    h = conv(x_nchw, p["w0"], p["b0"])
    h = lax.reduce_window(h, -jnp.inf, lax.max,
                          (1, 1, 3, 3), (1, 1, 2, 2), "VALID")
    for a, b in (("1a", "1b"), ("2a", "2b")):
        t = jax.nn.relu(conv(jax.nn.relu(h), p["w" + a], p["b" + a]))
        t = jax.nn.relu(conv(t, p["w" + b], p["b" + b]))
        h = h + t
    return h


# ---------------------------------------------------------------------------
if __name__ == "__main__":
    N, Cin, H, W = 2, 4, 16, 16
    depth = 8

    key = jax.random.PRNGKey(0)
    keys = jax.random.split(key, 11)

    def mk_w(k, cout, cin):  # PyTorch OIHW layout
        return (0.1 * jax.random.normal(k, (cout, cin, 3, 3))).astype(jnp.float32)

    def mk_b(k, cout):
        return (0.1 * jax.random.normal(k, (cout,))).astype(jnp.float32)

    params = {
        "w0": mk_w(keys[0], depth, Cin),    "b0": mk_b(keys[1], depth),
        "w1a": mk_w(keys[2], depth, depth), "b1a": mk_b(keys[3], depth),
        "w1b": mk_w(keys[4], depth, depth), "b1b": mk_b(keys[5], depth),
        "w2a": mk_w(keys[6], depth, depth), "b2a": mk_b(keys[7], depth),
        "w2b": mk_w(keys[8], depth, depth), "b2b": mk_b(keys[9], depth),
    }

    x = jax.random.normal(keys[10], (N, Cin, H, W), dtype=jnp.float32)

    prep = prepare_params(params, H, W)              # one-time weight packing
    out = jax.block_until_ready(conv_sequence(x, prep))
    ref = jax.block_until_ready(_ref_forward(x, params))

    assert out.shape == (N, depth, (H - 3) // 2 + 1, (W - 3) // 2 + 1), out.shape
    np.testing.assert_allclose(np.asarray(out), np.asarray(ref),
                               rtol=1e-4, atol=1e-4)
    print("KERNEL_OK")
</pallas_src>

<mosaic_0001>
module attributes {stable_mosaic.version = 11 : i64} {
  func.func @_conv_sequence_kernel(%arg0: i32, %arg1: memref<1x18x128xf32, #tpu.memory_space<vmem>>, %arg2: memref<3x128x128xf32, #tpu.memory_space<vmem>>, %arg3: memref<1x128xf32, #tpu.memory_space<vmem>>, %arg4: memref<3x128x128xf32, #tpu.memory_space<vmem>>, %arg5: memref<7x1xf32, #tpu.memory_space<vmem>>, %arg6: memref<3x128x128xf32, #tpu.memory_space<vmem>>, %arg7: memref<1x128xf32, #tpu.memory_space<vmem>>, %arg8: memref<3x128x128xf32, #tpu.memory_space<vmem>>, %arg9: memref<1x128xf32, #tpu.memory_space<vmem>>, %arg10: memref<3x128x128xf32, #tpu.memory_space<vmem>>, %arg11: memref<1x128xf32, #tpu.memory_space<vmem>>, %arg12: memref<3x128x128xf32, #tpu.memory_space<vmem>>, %arg13: memref<1x128xf32, #tpu.memory_space<vmem>>, %arg14: memref<1x7x128xf32, #tpu.memory_space<vmem>>, %arg15: memref<16x128xf32, #tpu.memory_space<vmem>>, %arg16: memref<9x128xf32, #tpu.memory_space<vmem>>) attributes {dimension_semantics = [#tpu.dimension_semantics<parallel>], iteration_bounds = array<i64: 2>, scalar_prefetch = 0 : i64, scratch_operands = 2 : i64, tpu.core_type = #tpu.core_type<tc>, window_params = [{transform_indices = @transform_0, window_bounds = array<i64: 1, 18, 128>}, {pipeline_mode = #tpu.pipeline_mode<synchronous>, transform_indices = @transform_1, window_bounds = array<i64: 3, 128, 128>}, {pipeline_mode = #tpu.pipeline_mode<synchronous>, transform_indices = @transform_2, window_bounds = array<i64: 1, 128>}, {pipeline_mode = #tpu.pipeline_mode<synchronous>, transform_indices = @transform_3, window_bounds = array<i64: 3, 128, 128>}, {pipeline_mode = #tpu.pipeline_mode<synchronous>, transform_indices = @transform_4, window_bounds = array<i64: 7, 1>}, {pipeline_mode = #tpu.pipeline_mode<synchronous>, transform_indices = @transform_5, window_bounds = array<i64: 3, 128, 128>}, {pipeline_mode = #tpu.pipeline_mode<synchronous>, transform_indices = @transform_6, window_bounds = array<i64: 1, 128>}, {pipeline_mode = #tpu.pipeline_mode<synchronous>, transform_indices = @transform_7, window_bounds = array<i64: 3, 128, 128>}, {pipeline_mode = #tpu.pipeline_mode<synchronous>, transform_indices = @transform_8, window_bounds = array<i64: 1, 128>}, {pipeline_mode = #tpu.pipeline_mode<synchronous>, transform_indices = @transform_9, window_bounds = array<i64: 3, 128, 128>}, {pipeline_mode = #tpu.pipeline_mode<synchronous>, transform_indices = @transform_10, window_bounds = array<i64: 1, 128>}, {pipeline_mode = #tpu.pipeline_mode<synchronous>, transform_indices = @transform_11, window_bounds = array<i64: 3, 128, 128>}, {pipeline_mode = #tpu.pipeline_mode<synchronous>, transform_indices = @transform_12, window_bounds = array<i64: 1, 128>}, {transform_indices = @transform_13, window_bounds = array<i64: 1, 7, 128>}]} {
    %c0 = arith.constant 0 : index
    %c0_0 = arith.constant 0 : index
    %0 = vector.load %arg3[%c0, %c0_0] : memref<1x128xf32, #tpu.memory_space<vmem>>, vector<1x128xf32>
    %c0_1 = arith.constant 0 : index
    %c0_2 = arith.constant 0 : index
    %c0_3 = arith.constant 0 : index
    %1 = vector.load %arg1[%c0_1, %c0_2, %c0_3] : memref<1x18x128xf32, #tpu.memory_space<vmem>>, vector<1x16x128xf32>
    %2 = vector.shape_cast %1 : vector<1x16x128xf32> to vector<16x128xf32>
    %c0_4 = arith.constant 0 : index
    %c0_5 = arith.constant 0 : index
    %c0_6 = arith.constant 0 : index
    %3 = vector.load %arg2[%c0_4, %c0_5, %c0_6] : memref<3x128x128xf32, #tpu.memory_space<vmem>>, vector<1x128x128xf32>
    %4 = vector.shape_cast %3 : vector<1x128x128xf32> to vector<128x128xf32>
    %cst = arith.constant dense<0.000000e+00> : vector<16x128xf32>
    %5 = tpu.matmul %2, %4, %cst {dimension_numbers = #tpu.dot_dimension_numbers<[1], [0], [0], [1], [0, 0, 1, 1], [], []>} : vector<16x128xf32>, vector<128x128xf32>, vector<16x128xf32> -> vector<16x128xf32>
    %c0_7 = arith.constant 0 : index
    %c1 = arith.constant 1 : index
    %c0_8 = arith.constant 0 : index
    %6 = vector.load %arg1[%c0_7, %c1, %c0_8] : memref<1x18x128xf32, #tpu.memory_space<vmem>>, vector<1x16x128xf32>
    %7 = vector.shape_cast %6 : vector<1x16x128xf32> to vector<16x128xf32>
    %c1_9 = arith.constant 1 : index
    %c0_10 = arith.constant 0 : index
    %c0_11 = arith.constant 0 : index
    %8 = vector.load %arg2[%c1_9, %c0_10, %c0_11] : memref<3x128x128xf32, #tpu.memory_space<vmem>>, vector<1x128x128xf32>
    %9 = vector.shape_cast %8 : vector<1x128x128xf32> to vector<128x128xf32>
    %cst_12 = arith.constant dense<0.000000e+00> : vector<16x128xf32>
    %10 = tpu.matmul %7, %9, %cst_12 {dimension_numbers = #tpu.dot_dimension_numbers<[1], [0], [0], [1], [0, 0, 1, 1], [], []>} : vector<16x128xf32>, vector<128x128xf32>, vector<16x128xf32> -> vector<16x128xf32>
    %11 = arith.addf %5, %10 : vector<16x128xf32>
    %c0_13 = arith.constant 0 : index
    %c2 = arith.constant 2 : index
    %c0_14 = arith.constant 0 : index
    %12 = vector.load %arg1[%c0_13, %c2, %c0_14] : memref<1x18x128xf32, #tpu.memory_space<vmem>>, vector<1x16x128xf32>
    %13 = vector.shape_cast %12 : vector<1x16x128xf32> to vector<16x128xf32>
    %c2_15 = arith.constant 2 : index
    %c0_16 = arith.constant 0 : index
    %c0_17 = arith.constant 0 : index
    %14 = vector.load %arg2[%c2_15, %c0_16, %c0_17] : memref<3x128x128xf32, #tpu.memory_space<vmem>>, vector<1x128x128xf32>
    %15 = vector.shape_cast %14 : vector<1x128x128xf32> to vector<128x128xf32>
    %cst_18 = arith.constant dense<0.000000e+00> : vector<16x128xf32>
    %16 = tpu.matmul %13, %15, %cst_18 {dimension_numbers = #tpu.dot_dimension_numbers<[1], [0], [0], [1], [0, 0, 1, 1], [], []>} : vector<16x128xf32>, vector<128x128xf32>, vector<16x128xf32> -> vector<16x128xf32>
    %17 = arith.addf %11, %16 : vector<16x128xf32>
    %18 = vector.broadcast %0 : vector<1x128xf32> to vector<16x128xf32>
    %19 = arith.addf %17, %18 : vector<16x128xf32>
    %c0_19 = arith.constant 0 : index
    %c0_20 = arith.constant 0 : index
    %20 = vector.load %arg15[%c0_19, %c0_20] : memref<16x128xf32, #tpu.memory_space<vmem>>, vector<16x128xf32>
    tpu.vector_store %arg15[%c0_19, %c0_20], %19 {strides = array<i32>} : memref<16x128xf32, #tpu.memory_space<vmem>>, vector<16x128xf32>,
    %c0_21 = arith.constant 0 : index
    %c0_22 = arith.constant 0 : index
    %21 = tpu.strided_load %arg15[%c0_21, %c0_22] {strides = array<i32: 2, 1>} : memref<16x128xf32, #tpu.memory_space<vmem>>, vector<7x128xf32>
    %c1_23 = arith.constant 1 : index
    %c0_24 = arith.constant 0 : index
    %22 = tpu.strided_load %arg15[%c1_23, %c0_24] {strides = array<i32: 2, 1>} : memref<16x128xf32, #tpu.memory_space<vmem>>, vector<7x128xf32>
    %23 = arith.maximumf %21, %22 : vector<7x128xf32>
    %c2_25 = arith.constant 2 : index
    %c0_26 = arith.constant 0 : index
    %24 = tpu.strided_load %arg15[%c2_25, %c0_26] {strides = array<i32: 2, 1>} : memref<16x128xf32, #tpu.memory_space<vmem>>, vector<7x128xf32>
    %25 = arith.maximumf %23, %24 : vector<7x128xf32>
    %c0_27 = arith.constant 0 : index
    %c0_28 = arith.constant 0 : index
    %c0_29 = arith.constant 0 : index
    %26 = vector.load %arg4[%c0_27, %c0_28, %c0_29] : memref<3x128x128xf32, #tpu.memory_space<vmem>>, vector<1x128x128xf32>
    %27 = vector.shape_cast %26 : vector<1x128x128xf32> to vector<128x128xf32>
    %cst_30 = arith.constant dense<0.000000e+00> : vector<7x128xf32>
    %28 = tpu.matmul %25, %27, %cst_30 {dimension_numbers = #tpu.dot_dimension_numbers<[1], [0], [0], [1], [0, 0, 1, 1], [], []>} : vector<7x128xf32>, vector<128x128xf32>, vector<7x128xf32> -> vector<7x128xf32>
    %c1_31 = arith.constant 1 : index
    %c0_32 = arith.constant 0 : index
    %c0_33 = arith.constant 0 : index
    %29 = vector.load %arg4[%c1_31, %c0_32, %c0_33] : memref<3x128x128xf32, #tpu.memory_space<vmem>>, vector<1x128x128xf32>
    %30 = vector.shape_cast %29 : vector<1x128x128xf32> to vector<128x128xf32>
    %cst_34 = arith.constant dense<0.000000e+00> : vector<7x128xf32>
    %31 = tpu.matmul %25, %30, %cst_34 {dimension_numbers = #tpu.dot_dimension_numbers<[1], [0], [0], [1], [0, 0, 1, 1], [], []>} : vector<7x128xf32>, vector<128x128xf32>, vector<7x128xf32> -> vector<7x128xf32>
    %32 = arith.maximumf %28, %31 : vector<7x128xf32>
    %c2_35 = arith.constant 2 : index
    %c0_36 = arith.constant 0 : index
    %c0_37 = arith.constant 0 : index
    %33 = vector.load %arg4[%c2_35, %c0_36, %c0_37] : memref<3x128x128xf32, #tpu.memory_space<vmem>>, vector<1x128x128xf32>
    %34 = vector.shape_cast %33 : vector<1x128x128xf32> to vector<128x128xf32>
    %cst_38 = arith.constant dense<0.000000e+00> : vector<7x128xf32>
    %35 = tpu.matmul %25, %34, %cst_38 {dimension_numbers = #tpu.dot_dimension_numbers<[1], [0], [0], [1], [0, 0, 1, 1], [], []>} : vector<7x128xf32>, vector<128x128xf32>, vector<7x128xf32> -> vector<7x128xf32>
    %36 = arith.maximumf %32, %35 : vector<7x128xf32>
    %c0_39 = arith.constant 0 : index
    %c0_40 = arith.constant 0 : index
    %37 = vector.load %arg5[%c0_39, %c0_40] : memref<7x1xf32, #tpu.memory_space<vmem>>, vector<7x1xf32>
    %38 = vector.broadcast %37 : vector<7x1xf32> to vector<7x128xf32>
    %39 = arith.mulf %36, %38 : vector<7x128xf32>
    %cst_41 = arith.constant 0.000000e+00 : f32
    %40 = vector.broadcast %cst_41 : f32 to vector<9x128xf32>
    %c0_42 = arith.constant 0 : index
    %c0_43 = arith.constant 0 : index
    %41 = vector.load %arg16[%c0_42, %c0_43] : memref<9x128xf32, #tpu.memory_space<vmem>>, vector<9x128xf32>
    tpu.vector_store %arg16[%c0_42, %c0_43], %40 {strides = array<i32>} : memref<9x128xf32, #tpu.memory_space<vmem>>, vector<9x128xf32>,
    %cst_44 = arith.constant 0.000000e+00 : f32
    %42 = vector.broadcast %cst_44 : f32 to vector<7x128xf32>
    %43 = arith.maximumf %39, %42 : vector<7x128xf32>
    %c1_45 = arith.constant 1 : index
    %c0_46 = arith.constant 0 : index
    %44 = vector.load %arg16[%c1_45, %c0_46] : memref<9x128xf32, #tpu.memory_space<vmem>>, vector<7x128xf32>
    tpu.vector_store %arg16[%c1_45, %c0_46], %43 {strides = array<i32>} : memref<9x128xf32, #tpu.memory_space<vmem>>, vector<7x128xf32>,
    %c0_47 = arith.constant 0 : index
    %c0_48 = arith.constant 0 : index
    %45 = vector.load %arg7[%c0_47, %c0_48] : memref<1x128xf32, #tpu.memory_space<vmem>>, vector<1x128xf32>
    %c0_49 = arith.constant 0 : index
    %c0_50 = arith.constant 0 : index
    %46 = vector.load %arg16[%c0_49, %c0_50] : memref<9x128xf32, #tpu.memory_space<vmem>>, vector<7x128xf32>
    %c0_51 = arith.constant 0 : index
    %c0_52 = arith.constant 0 : index
    %c0_53 = arith.constant 0 : index
    %47 = vector.load %arg6[%c0_51, %c0_52, %c0_53] : memref<3x128x128xf32, #tpu.memory_space<vmem>>, vector<1x128x128xf32>
    %48 = vector.shape_cast %47 : vector<1x128x128xf32> to vector<128x128xf32>
    %cst_54 = arith.constant dense<0.000000e+00> : vector<7x128xf32>
    %49 = tpu.matmul %46, %48, %cst_54 {dimension_numbers = #tpu.dot_dimension_numbers<[1], [0], [0], [1], [0, 0, 1, 1], [], []>} : vector<7x128xf32>, vector<128x128xf32>, vector<7x128xf32> -> vector<7x128xf32>
    %c1_55 = arith.constant 1 : index
    %c0_56 = arith.constant 0 : index
    %50 = vector.load %arg16[%c1_55, %c0_56] : memref<9x128xf32, #tpu.memory_space<vmem>>, vector<7x128xf32>
    %c1_57 = arith.constant 1 : index
    %c0_58 = arith.constant 0 : index
    %c0_59 = arith.constant 0 : index
    %51 = vector.load %arg6[%c1_57, %c0_58, %c0_59] : memref<3x128x128xf32, #tpu.memory_space<vmem>>, vector<1x128x128xf32>
    %52 = vector.shape_cast %51 : vector<1x128x128xf32> to vector<128x128xf32>
    %cst_60 = arith.constant dense<0.000000e+00> : vector<7x128xf32>
    %53 = tpu.matmul %50, %52, %cst_60 {dimension_numbers = #tpu.dot_dimension_numbers<[1], [0], [0], [1], [0, 0, 1, 1], [], []>} : vector<7x128xf32>, vector<128x128xf32>, vector<7x128xf32> -> vector<7x128xf32>
    %54 = arith.addf %49, %53 : vector<7x128xf32>
    %c2_61 = arith.constant 2 : index
    %c0_62 = arith.constant 0 : index
    %55 = vector.load %arg16[%c2_61, %c0_62] : memref<9x128xf32, #tpu.memory_space<vmem>>, vector<7x128xf32>
    %c2_63 = arith.constant 2 : index
    %c0_64 = arith.constant 0 : index
    %c0_65 = arith.constant 0 : index
    %56 = vector.load %arg6[%c2_63, %c0_64, %c0_65] : memref<3x128x128xf32, #tpu.memory_space<vmem>>, vector<1x128x128xf32>
    %57 = vector.shape_cast %56 : vector<1x128x128xf32> to vector<128x128xf32>
    %cst_66 = arith.constant dense<0.000000e+00> : vector<7x128xf32>
    %58 = tpu.matmul %55, %57, %cst_66 {dimension_numbers = #tpu.dot_dimension_numbers<[1], [0], [0], [1], [0, 0, 1, 1], [], []>} : vector<7x128xf32>, vector<128x128xf32>, vector<7x128xf32> -> vector<7x128xf32>
    %59 = arith.addf %54, %58 : vector<7x128xf32>
    %60 = vector.broadcast %45 : vector<1x128xf32> to vector<7x128xf32>
    %61 = arith.addf %59, %60 : vector<7x128xf32>
    %cst_67 = arith.constant 0.000000e+00 : f32
    %62 = vector.broadcast %cst_67 : f32 to vector<7x128xf32>
    %63 = arith.maximumf %61, %62 : vector<7x128xf32>
    %64 = vector.broadcast %37 : vector<7x1xf32> to vector<7x128xf32>
    %65 = arith.mulf %63, %64 : vector<7x128xf32>
    %c1_68 = arith.constant 1 : index
    %c0_69 = arith.constant 0 : index
    %66 = vector.load %arg16[%c1_68, %c0_69] : memref<9x128xf32, #tpu.memory_space<vmem>>, vector<7x128xf32>
    tpu.vector_store %arg16[%c1_68, %c0_69], %65 {strides = array<i32>} : memref<9x128xf32, #tpu.memory_space<vmem>>, vector<7x128xf32>,
    %c0_70 = arith.constant 0 : index
    %c0_71 = arith.constant 0 : index
    %67 = vector.load %arg9[%c0_70, %c0_71] : memref<1x128xf32, #tpu.memory_space<vmem>>, vector<1x128xf32>
    %c0_72 = arith.constant 0 : index
    %c0_73 = arith.constant 0 : index
    %68 = vector.load %arg16[%c0_72, %c0_73] : memref<9x128xf32, #tpu.memory_space<vmem>>, vector<7x128xf32>
    %c0_74 = arith.constant 0 : index
    %c0_75 = arith.constant 0 : index
    %c0_76 = arith.constant 0 : index
    %69 = vector.load %arg8[%c0_74, %c0_75, %c0_76] : memref<3x128x128xf32, #tpu.memory_space<vmem>>, vector<1x128x128xf32>
    %70 = vector.shape_cast %69 : vector<1x128x128xf32> to vector<128x128xf32>
    %cst_77 = arith.constant dense<0.000000e+00> : vector<7x128xf32>
    %71 = tpu.matmul %68, %70, %cst_77 {dimension_numbers = #tpu.dot_dimension_numbers<[1], [0], [0], [1], [0, 0, 1, 1], [], []>} : vector<7x128xf32>, vector<128x128xf32>, vector<7x128xf32> -> vector<7x128xf32>
    %c1_78 = arith.constant 1 : index
    %c0_79 = arith.constant 0 : index
    %72 = vector.load %arg16[%c1_78, %c0_79] : memref<9x128xf32, #tpu.memory_space<vmem>>, vector<7x128xf32>
    %c1_80 = arith.constant 1 : index
    %c0_81 = arith.constant 0 : index
    %c0_82 = arith.constant 0 : index
    %73 = vector.load %arg8[%c1_80, %c0_81, %c0_82] : memref<3x128x128xf32, #tpu.memory_space<vmem>>, vector<1x128x128xf32>
    %74 = vector.shape_cast %73 : vector<1x128x128xf32> to vector<128x128xf32>
    %cst_83 = arith.constant dense<0.000000e+00> : vector<7x128xf32>
    %75 = tpu.matmul %72, %74, %cst_83 {dimension_numbers = #tpu.dot_dimension_numbers<[1], [0], [0], [1], [0, 0, 1, 1], [], []>} : vector<7x128xf32>, vector<128x128xf32>, vector<7x128xf32> -> vector<7x128xf32>
    %76 = arith.addf %71, %75 : vector<7x128xf32>
    %c2_84 = arith.constant 2 : index
    %c0_85 = arith.constant 0 : index
    %77 = vector.load %arg16[%c2_84, %c0_85] : memref<9x128xf32, #tpu.memory_space<vmem>>, vector<7x128xf32>
    %c2_86 = arith.constant 2 : index
    %c0_87 = arith.constant 0 : index
    %c0_88 = arith.constant 0 : index
    %78 = vector.load %arg8[%c2_86, %c0_87, %c0_88] : memref<3x128x128xf32, #tpu.memory_space<vmem>>, vector<1x128x128xf32>
    %79 = vector.shape_cast %78 : vector<1x128x128xf32> to vector<128x128xf32>
    %cst_89 = arith.constant dense<0.000000e+00> : vector<7x128xf32>
    %80 = tpu.matmul %77, %79, %cst_89 {dimension_numbers = #tpu.dot_dimension_numbers<[1], [0], [0], [1], [0, 0, 1, 1], [], []>} : vector<7x128xf32>, vector<128x128xf32>, vector<7x128xf32> -> vector<7x128xf32>
    %81 = arith.addf %76, %80 : vector<7x128xf32>
    %82 = vector.broadcast %67 : vector<1x128xf32> to vector<7x128xf32>
    %83 = arith.addf %81, %82 : vector<7x128xf32>
    %cst_90 = arith.constant 0.000000e+00 : f32
    %84 = vector.broadcast %cst_90 : f32 to vector<7x128xf32>
    %85 = arith.maximumf %83, %84 : vector<7x128xf32>
    %86 = vector.broadcast %37 : vector<7x1xf32> to vector<7x128xf32>
    %87 = arith.mulf %85, %86 : vector<7x128xf32>
    %88 = arith.addf %39, %87 : vector<7x128xf32>
    %cst_91 = arith.constant 0.000000e+00 : f32
    %89 = vector.broadcast %cst_91 : f32 to vector<7x128xf32>
    %90 = arith.maximumf %88, %89 : vector<7x128xf32>
    %c1_92 = arith.constant 1 : index
    %c0_93 = arith.constant 0 : index
    %91 = vector.load %arg16[%c1_92, %c0_93] : memref<9x128xf32, #tpu.memory_space<vmem>>, vector<7x128xf32>
    tpu.vector_store %arg16[%c1_92, %c0_93], %90 {strides = array<i32>} : memref<9x128xf32, #tpu.memory_space<vmem>>, vector<7x128xf32>,
    %c0_94 = arith.constant 0 : index
    %c0_95 = arith.constant 0 : index
    %92 = vector.load %arg11[%c0_94, %c0_95] : memref<1x128xf32, #tpu.memory_space<vmem>>, vector<1x128xf32>
    %c0_96 = arith.constant 0 : index
    %c0_97 = arith.constant 0 : index
    %93 = vector.load %arg16[%c0_96, %c0_97] : memref<9x128xf32, #tpu.memory_space<vmem>>, vector<7x128xf32>
    %c0_98 = arith.constant 0 : index
    %c0_99 = arith.constant 0 : index
    %c0_100 = arith.constant 0 : index
    %94 = vector.load %arg10[%c0_98, %c0_99, %c0_100] : memref<3x128x128xf32, #tpu.memory_space<vmem>>, vector<1x128x128xf32>
    %95 = vector.shape_cast %94 : vector<1x128x128xf32> to vector<128x128xf32>
    %cst_101 = arith.constant dense<0.000000e+00> : vector<7x128xf32>
    %96 = tpu.matmul %93, %95, %cst_101 {dimension_numbers = #tpu.dot_dimension_numbers<[1], [0], [0], [1], [0, 0, 1, 1], [], []>} : vector<7x128xf32>, vector<128x128xf32>, vector<7x128xf32> -> vector<7x128xf32>
    %c1_102 = arith.constant 1 : index
    %c0_103 = arith.constant 0 : index
    %97 = vector.load %arg16[%c1_102, %c0_103] : memref<9x128xf32, #tpu.memory_space<vmem>>, vector<7x128xf32>
    %c1_104 = arith.constant 1 : index
    %c0_105 = arith.constant 0 : index
    %c0_106 = arith.constant 0 : index
    %98 = vector.load %arg10[%c1_104, %c0_105, %c0_106] : memref<3x128x128xf32, #tpu.memory_space<vmem>>, vector<1x128x128xf32>
    %99 = vector.shape_cast %98 : vector<1x128x128xf32> to vector<128x128xf32>
    %cst_107 = arith.constant dense<0.000000e+00> : vector<7x128xf32>
    %100 = tpu.matmul %97, %99, %cst_107 {dimension_numbers = #tpu.dot_dimension_numbers<[1], [0], [0], [1], [0, 0, 1, 1], [], []>} : vector<7x128xf32>, vector<128x128xf32>, vector<7x128xf32> -> vector<7x128xf32>
    %101 = arith.addf %96, %100 : vector<7x128xf32>
    %c2_108 = arith.constant 2 : index
    %c0_109 = arith.constant 0 : index
    %102 = vector.load %arg16[%c2_108, %c0_109] : memref<9x128xf32, #tpu.memory_space<vmem>>, vector<7x128xf32>
    %c2_110 = arith.constant 2 : index
    %c0_111 = arith.constant 0 : index
    %c0_112 = arith.constant 0 : index
    %103 = vector.load %arg10[%c2_110, %c0_111, %c0_112] : memref<3x128x128xf32, #tpu.memory_space<vmem>>, vector<1x128x128xf32>
    %104 = vector.shape_cast %103 : vector<1x128x128xf32> to vector<128x128xf32>
    %cst_113 = arith.constant dense<0.000000e+00> : vector<7x128xf32>
    %105 = tpu.matmul %102, %104, %cst_113 {dimension_numbers = #tpu.dot_dimension_numbers<[1], [0], [0], [1], [0, 0, 1, 1], [], []>} : vector<7x128xf32>, vector<128x128xf32>, vector<7x128xf32> -> vector<7x128xf32>
    %106 = arith.addf %101, %105 : vector<7x128xf32>
    %107 = vector.broadcast %92 : vector<1x128xf32> to vector<7x128xf32>
    %108 = arith.addf %106, %107 : vector<7x128xf32>
    %cst_114 = arith.constant 0.000000e+00 : f32
    %109 = vector.broadcast %cst_114 : f32 to vector<7x128xf32>
    %110 = arith.maximumf %108, %109 : vector<7x128xf32>
    %111 = vector.broadcast %37 : vector<7x1xf32> to vector<7x128xf32>
    %112 = arith.mulf %110, %111 : vector<7x128xf32>
    %c1_115 = arith.constant 1 : index
    %c0_116 = arith.constant 0 : index
    %113 = vector.load %arg16[%c1_115, %c0_116] : memref<9x128xf32, #tpu.memory_space<vmem>>, vector<7x128xf32>
    tpu.vector_store %arg16[%c1_115, %c0_116], %112 {strides = array<i32>} : memref<9x128xf32, #tpu.memory_space<vmem>>, vector<7x128xf32>,
    %c0_117 = arith.constant 0 : index
    %c0_118 = arith.constant 0 : index
    %114 = vector.load %arg13[%c0_117, %c0_118] : memref<1x128xf32, #tpu.memory_space<vmem>>, vector<1x128xf32>
    %c0_119 = arith.constant 0 : index
    %c0_120 = arith.constant 0 : index
    %115 = vector.load %arg16[%c0_119, %c0_120] : memref<9x128xf32, #tpu.memory_space<vmem>>, vector<7x128xf32>
    %c0_121 = arith.constant 0 : index
    %c0_122 = arith.constant 0 : index
    %c0_123 = arith.constant 0 : index
    %116 = vector.load %arg12[%c0_121, %c0_122, %c0_123] : memref<3x128x128xf32, #tpu.memory_space<vmem>>, vector<1x128x128xf32>
    %117 = vector.shape_cast %116 : vector<1x128x128xf32> to vector<128x128xf32>
    %cst_124 = arith.constant dense<0.000000e+00> : vector<7x128xf32>
    %118 = tpu.matmul %115, %117, %cst_124 {dimension_numbers = #tpu.dot_dimension_numbers<[1], [0], [0], [1], [0, 0, 1, 1], [], []>} : vector<7x128xf32>, vector<128x128xf32>, vector<7x128xf32> -> vector<7x128xf32>
    %c1_125 = arith.constant 1 : index
    %c0_126 = arith.constant 0 : index
    %119 = vector.load %arg16[%c1_125, %c0_126] : memref<9x128xf32, #tpu.memory_space<vmem>>, vector<7x128xf32>
    %c1_127 = arith.constant 1 : index
    %c0_128 = arith.constant 0 : index
    %c0_129 = arith.constant 0 : index
    %120 = vector.load %arg12[%c1_127, %c0_128, %c0_129] : memref<3x128x128xf32, #tpu.memory_space<vmem>>, vector<1x128x128xf32>
    %121 = vector.shape_cast %120 : vector<1x128x128xf32> to vector<128x128xf32>
    %cst_130 = arith.constant dense<0.000000e+00> : vector<7x128xf32>
    %122 = tpu.matmul %119, %121, %cst_130 {dimension_numbers = #tpu.dot_dimension_numbers<[1], [0], [0], [1], [0, 0, 1, 1], [], []>} : vector<7x128xf32>, vector<128x128xf32>, vector<7x128xf32> -> vector<7x128xf32>
    %123 = arith.addf %118, %122 : vector<7x128xf32>
    %c2_131 = arith.constant 2 : index
    %c0_132 = arith.constant 0 : index
    %124 = vector.load %arg16[%c2_131, %c0_132] : memref<9x128xf32, #tpu.memory_space<vmem>>, vector<7x128xf32>
    %c2_133 = arith.constant 2 : index
    %c0_134 = arith.constant 0 : index
    %c0_135 = arith.constant 0 : index
    %125 = vector.load %arg12[%c2_133, %c0_134, %c0_135] : memref<3x128x128xf32, #tpu.memory_space<vmem>>, vector<1x128x128xf32>
    %126 = vector.shape_cast %125 : vector<1x128x128xf32> to vector<128x128xf32>
    %cst_136 = arith.constant dense<0.000000e+00> : vector<7x128xf32>
    %127 = tpu.matmul %124, %126, %cst_136 {dimension_numbers = #tpu.dot_dimension_numbers<[1], [0], [0], [1], [0, 0, 1, 1], [], []>} : vector<7x128xf32>, vector<128x128xf32>, vector<7x128xf32> -> vector<7x128xf32>
    %128 = arith.addf %123, %127 : vector<7x128xf32>
    %129 = vector.broadcast %114 : vector<1x128xf32> to vector<7x128xf32>
    %130 = arith.addf %128, %129 : vector<7x128xf32>
    %cst_137 = arith.constant 0.000000e+00 : f32
    %131 = vector.broadcast %cst_137 : f32 to vector<7x128xf32>
    %132 = arith.maximumf %130, %131 : vector<7x128xf32>
    %133 = vector.broadcast %37 : vector<7x1xf32> to vector<7x128xf32>
    %134 = arith.mulf %132, %133 : vector<7x128xf32>
    %135 = arith.addf %88, %134 : vector<7x128xf32>
    %c0_138 = arith.constant 0 : index
    %c0_139 = arith.constant 0 : index
    %c0_140 = arith.constant 0 : index
    %136 = vector.load %arg14[%c0_138, %c0_139, %c0_140] : memref<1x7x128xf32, #tpu.memory_space<vmem>>, vector<1x7x128xf32>
    %137 = vector.shape_cast %136 : vector<1x7x128xf32> to vector<7x128xf32>
    %138 = vector.shape_cast %135 : vector<7x128xf32> to vector<1x7x128xf32>
    tpu.vector_store %arg14[%c0_138, %c0_139, %c0_140], %138 {strides = array<i32>} : memref<1x7x128xf32, #tpu.memory_space<vmem>>, vector<1x7x128xf32>,
    return
  }
  func.func @transform_0(%arg0: i32) -> (i32, i32, i32) {
    %c0_i32 = arith.constant 0 : i32
    %c0_i32_0 = arith.constant 0 : i32
    %c0_i32_1 = arith.constant 0 : i32
    return %arg0, %c0_i32, %c0_i32_0 : i32, i32, i32
  }
  func.func @transform_1(%arg0: i32) -> (i32, i32, i32) {
    %c0_i32 = arith.constant 0 : i32
    %c0_i32_0 = arith.constant 0 : i32
    %c0_i32_1 = arith.constant 0 : i32
    %c0_i32_2 = arith.constant 0 : i32
    return %c0_i32, %c0_i32_0, %c0_i32_1 : i32, i32, i32
  }
  func.func @transform_2(%arg0: i32) -> (i32, i32) {
    %c0_i32 = arith.constant 0 : i32
    %c0_i32_0 = arith.constant 0 : i32
    %c0_i32_1 = arith.constant 0 : i32
    return %c0_i32, %c0_i32_0 : i32, i32
  }
  func.func @transform_3(%arg0: i32) -> (i32, i32, i32) {
    %c0_i32 = arith.constant 0 : i32
    %c0_i32_0 = arith.constant 0 : i32
    %c0_i32_1 = arith.constant 0 : i32
    %c0_i32_2 = arith.constant 0 : i32
    return %c0_i32, %c0_i32_0, %c0_i32_1 : i32, i32, i32
  }
  func.func @transform_4(%arg0: i32) -> (i32, i32) {
    %c0_i32 = arith.constant 0 : i32
    %c0_i32_0 = arith.constant 0 : i32
    %c0_i32_1 = arith.constant 0 : i32
    return %c0_i32, %c0_i32_0 : i32, i32
  }
  func.func @transform_5(%arg0: i32) -> (i32, i32, i32) {
    %c0_i32 = arith.constant 0 : i32
    %c0_i32_0 = arith.constant 0 : i32
    %c0_i32_1 = arith.constant 0 : i32
    %c0_i32_2 = arith.constant 0 : i32
    return %c0_i32, %c0_i32_0, %c0_i32_1 : i32, i32, i32
  }
  func.func @transform_6(%arg0: i32) -> (i32, i32) {
    %c0_i32 = arith.constant 0 : i32
    %c0_i32_0 = arith.constant 0 : i32
    %c0_i32_1 = arith.constant 0 : i32
    return %c0_i32, %c0_i32_0 : i32, i32
  }
  func.func @transform_7(%arg0: i32) -> (i32, i32, i32) {
    %c0_i32 = arith.constant 0 : i32
    %c0_i32_0 = arith.constant 0 : i32
    %c0_i32_1 = arith.constant 0 : i32
    %c0_i32_2 = arith.constant 0 : i32
    return %c0_i32, %c0_i32_0, %c0_i32_1 : i32, i32, i32
  }
  func.func @transform_8(%arg0: i32) -> (i32, i32) {
    %c0_i32 = arith.constant 0 : i32
    %c0_i32_0 = arith.constant 0 : i32
    %c0_i32_1 = arith.constant 0 : i32
    return %c0_i32, %c0_i32_0 : i32, i32
  }
  func.func @transform_9(%arg0: i32) -> (i32, i32, i32) {
    %c0_i32 = arith.constant 0 : i32
    %c0_i32_0 = arith.constant 0 : i32
    %c0_i32_1 = arith.constant 0 : i32
    %c0_i32_2 = arith.constant 0 : i32
    return %c0_i32, %c0_i32_0, %c0_i32_1 : i32, i32, i32
  }
  func.func @transform_10(%arg0: i32) -> (i32, i32) {
    %c0_i32 = arith.constant 0 : i32
    %c0_i32_0 = arith.constant 0 : i32
    %c0_i32_1 = arith.constant 0 : i32
    return %c0_i32, %c0_i32_0 : i32, i32
  }
  func.func @transform_11(%arg0: i32) -> (i32, i32, i32) {
    %c0_i32 = arith.constant 0 : i32
    %c0_i32_0 = arith.constant 0 : i32
    %c0_i32_1 = arith.constant 0 : i32
    %c0_i32_2 = arith.constant 0 : i32
    return %c0_i32, %c0_i32_0, %c0_i32_1 : i32, i32, i32
  }
  func.func @transform_12(%arg0: i32) -> (i32, i32) {
    %c0_i32 = arith.constant 0 : i32
    %c0_i32_0 = arith.constant 0 : i32
    %c0_i32_1 = arith.constant 0 : i32
    return %c0_i32, %c0_i32_0 : i32, i32
  }
  func.func @transform_13(%arg0: i32) -> (i32, i32, i32) {
    %c0_i32 = arith.constant 0 : i32
    %c0_i32_0 = arith.constant 0 : i32
    %c0_i32_1 = arith.constant 0 : i32
    return %arg0, %c0_i32, %c0_i32_0 : i32, i32, i32
  }
}

</mosaic_0001>

<bundles_post_ra>
// kernel: tpu_custom_call.1
= control target key start
LH: loop header
LB: loop body
LE: loop exit
PB: predicated region body
PF: predicated region fallthrough
CT: control target
= control target key end

     0   :  { %18 = vsyncpa [#allocation5], 0  ;;  %s4071_s0 = inlined_call_operand.vmem [shape: f32[2,18,128], index: 0, kind: input, shape index: {}]   ;;  %s4072_s1 = inlined_call_operand.hbm [shape: f32[3,128,128], index: 1, kind: input, shape index: {}]   ;;  %s4073_s2 = inlined_call_operand.vmem [shape: f32[1,128], index: 2, kind: input, shape index: {}]   ;;  %s4074_s3 = inlined_call_operand.hbm [shape: f32[3,128,128], index: 3, kind: input, shape index: {}]   ;;  %s4075_s4 = inlined_call_operand.vmem [shape: f32[7,1], index: 4, kind: input, shape index: {}]   ;;  %s4076_s5 = inlined_call_operand.hbm [shape: f32[3,128,128], index: 5, kind: input, shape index: {}]   ;;  %s4077_s6 = inlined_call_operand.vmem [shape: f32[1,128], index: 6, kind: input, shape index: {}]   ;;  %s4078_s7 = inlined_call_operand.hbm [shape: f32[3,128,128], index: 7, kind: input, shape index: {}]   ;;  %s4079_s8 = inlined_call_operand.vmem [shape: f32[1,128], index: 8, kind: input, shape index: {}]   ;;  %s4080_s9 = inlined_call_operand.hbm [shape: f32[3,128,128], index: 9, kind: input, shape index: {}]   ;;  %s4081_s10 = inlined_call_operand.vmem [shape: f32[1,128], index: 10, kind: input, shape index: {}]   ;;  %s4082_s11 = inlined_call_operand.hbm [shape: f32[3,128,128], index: 11, kind: input, shape index: {}]   ;;  %s4083_s12 = inlined_call_operand.vmem [shape: f32[1,128], index: 12, kind: input, shape index: {}]   ;;  %s4084_s13 = inlined_call_operand.vmem [shape: f32[2,7,128], index: 13, kind: output, shape index: {}]  }
   0x1   :  { %19 = vsyncpa [#allocation7], 0 }
   0x2   :  { %20 = vsyncpa [#allocation10], 0 }
   0x3   :  { %21 = vsyncpa [#allocation13], 0  ;;  %s3619_s25 = smov 0  }
   0x4 LB: > { %s3625_s26 = sadd.s32 4294967295, %s3536_s25   ;;  %p2319_p0 = scmp.ge.s32.totalorder %s3536_s25, 1  ;;  %s3536_s25 = sphi %s3619_s25, %s27_s25  }
   0x5   : > { %p336_p1 = scmp.lt.s32.totalorder %s3536_s25, 3  ;;  %p3326_p2 = scmp.eq.s32.totalorder %s3625_s26, 0 }
   0x6   : > { %s3538_s28 = smov [#allocation6]   ;;  %s3539_s30 = smov [#allocation9]  }
   0x7   : > { %p3630_p3 = pnand %p2319_p0, %p336_p1  ;;  %s364_s29 = sshll.u32 %s3538_s28, 4  ;;  %s365_s29 = int_to_ptr.vmem [resolvable:$true] %s364_s29 }
   0x8   : > { %s396_s14 = sshll.u32 %s3539_s30, 4  ;;  %s3540_s16 = smov [#allocation4]   ;;  %s3636_s14 = int_to_ptr.vmem [resolvable:$true] %s396_s14 }
   0x9   : > { %p3307_p4 = pneg %p3630_p3  ;;  %s348_s17 = sshll.u32 %s3540_s16, 4  ;;  %s3644_s17 = int_to_ptr.vmem [resolvable:$true] %s348_s17 }
   0xa   : > { %s3541_s18 = smov [#allocation8]   ;;  %s3369_s21 = scalar_lea.vmem %s365_s29, 6144 }
   0xb   : > { %p3640_p5 = pnand %p3326_p2, %p3307_p4  ;;  %s3646_s19 = sshll.u32 %s3541_s18, 4  ;;  %s381_s19 = int_to_ptr.vmem [resolvable:$true] %s3646_s19 }
   0xc   : > { %p3370_p7 = scmp.ne.s32.totalorder %s365_s29, %s3369_s21  ;;  %p3377_p10 = scmp.lt.s32.totalorder %s365_s29, %s365_s29 }
   0xd   : > { %p3650_p6 = pneg %p3640_p5  ;;  %p3378_p11 = scmp.lt.s32.totalorder %s3369_s21, %s3369_s21 }
   0xf   : > { %p3372_p8 = pnand %p3370_p7, %p3650_p6  ;;  %p3379_p12 = por %p3378_p11, %p3377_p10 }
  0x11   : > { %p3373_p9 = pneg %p3372_p8 }
  0x13   : > { %p3380_p13 = pnand %p3379_p12, %p3373_p9 }
  0x15   : > { %3383 = shalt.err (!%p3380_p13)
}
  0x16   : > { %s3542_s22 = smov 128   ;;  %s3543_s23 = smov 8  }
  0x17   : > { %3313 = dma.hbm_to_vmem [thread:$0]  (!%p3640_p5), %s4074_s3, 6144, %s365_s29, [#allocation7], %s3542_s22, %s3542_s22, %s3543_s23  }
  0x18   : > { %s3395_s30 = scalar_lea.vmem %s3636_s14, 6144  ;;  %p3403_p7 = scmp.lt.s32.totalorder %s3636_s14, %s3636_s14 }
  0x19   : > { %p3396_p0 = scmp.ne.s32.totalorder %s3636_s14, %s3395_s30  ;;  %p3404_p8 = scmp.lt.s32.totalorder %s3395_s30, %s3395_s30 }
  0x1b   : > { %p3398_p1 = pnand %p3396_p0, %p3650_p6  ;;  %p3405_p9 = por %p3404_p8, %p3403_p7 }
  0x1d   : > { %p3399_p4 = pneg %p3398_p1 }
  0x1f   : > { %p3406_p10 = pnand %p3405_p9, %p3399_p4 }
  0x21   : > { %3409 = shalt.err (!%p3406_p10)
}
  0x22   : > { %3319 = dma.hbm_to_vmem [thread:$0]  (!%p3640_p5), %s4078_s7, 6144, %s3636_s14, [#allocation10], %s3542_s22, %s3542_s22, %s3543_s23  }
  0x23   : > { %s3421_s29 = scalar_lea.vmem %s3644_s17, 6144  ;;  %p3429_p0 = scmp.lt.s32.totalorder %s3644_s17, %s3644_s17 }
  0x24   : > { %p3422_p11 = scmp.ne.s32.totalorder %s3644_s17, %s3421_s29  ;;  %p3430_p1 = scmp.lt.s32.totalorder %s3421_s29, %s3421_s29 }
  0x26   : > { %p3424_p12 = pnand %p3422_p11, %p3650_p6  ;;  %p3431_p4 = por %p3430_p1, %p3429_p0 }
  0x28   : > { %p3425_p13 = pneg %p3424_p12 }
  0x2a   : > { %p3432_p7 = pnand %p3431_p4, %p3425_p13 }
  0x2c   : > { %3435 = shalt.err (!%p3432_p7)
}
  0x2d   : > { %3310 = dma.hbm_to_vmem [thread:$0]  (!%p3640_p5), %s4072_s1, 6144, %s3644_s17, [#allocation5], %s3542_s22, %s3542_s22, %s3543_s23  }
  0x2e   : > { %s3447_s14 = scalar_lea.vmem %s381_s19, 6144  ;;  %p3455_p11 = scmp.lt.s32.totalorder %s381_s19, %s381_s19 }
  0x2f   : > { %p3448_p8 = scmp.ne.s32.totalorder %s381_s19, %s3447_s14  ;;  %p3456_p12 = scmp.lt.s32.totalorder %s3447_s14, %s3447_s14 }
  0x31   : > { %p3450_p9 = pnand %p3448_p8, %p3650_p6  ;;  %p3457_p13 = por %p3456_p12, %p3455_p11 }
  0x33   : > { %p3451_p10 = pneg %p3450_p9 }
  0x35   : > { %p3458_p0 = pnand %p3457_p13, %p3451_p10 }
  0x37   : > { %3461 = shalt.err (!%p3458_p0)
}
  0x38   : > { %3316 = dma.hbm_to_vmem [thread:$0]  (!%p3640_p5), %s4076_s5, 6144, %s381_s19, [#allocation7], %s3542_s22, %s3542_s22, %s3543_s23  }
  0x39   : > { %s3544_s17 = smov [#allocation11]   ;;  %s3545_s18 = smov [#allocation12]  }
  0x3a   : > { %s412_s16 = sshll.u32 %s3544_s17, 4  ;;  %s428_s29 = sshll.u32 %s3545_s18, 4  ;;  %s413_s16 = int_to_ptr.vmem [resolvable:$true] %s412_s16  ;;  %s429_s29 = int_to_ptr.vmem [resolvable:$true] %s428_s29 }
  0x3b   : > { %s3473_s21 = scalar_lea.vmem %s413_s16, 6144  ;;  %p3481_p8 = scmp.lt.s32.totalorder %s413_s16, %s413_s16 }
  0x3c   : > { %p3474_p1 = scmp.ne.s32.totalorder %s413_s16, %s3473_s21  ;;  %p3482_p9 = scmp.lt.s32.totalorder %s3473_s21, %s3473_s21 }
  0x3e   : > { %p3476_p4 = pnand %p3474_p1, %p3650_p6  ;;  %p3483_p10 = por %p3482_p9, %p3481_p8 }
  0x40   : > { %p3477_p7 = pneg %p3476_p4 }
  0x42   : > { %p3484_p11 = pnand %p3483_p10, %p3477_p7 }
  0x44   : > { %3487 = shalt.err (!%p3484_p11)
}
  0x45   : > { %3322 = dma.hbm_to_vmem [thread:$0]  (!%p3640_p5), %s4080_s9, 6144, %s413_s16, [#allocation10], %s3542_s22, %s3542_s22, %s3543_s23  }
  0x46   : > { %s3499_s14 = scalar_lea.vmem %s429_s29, 6144  ;;  %p3507_p1 = scmp.lt.s32.totalorder %s429_s29, %s429_s29 }
  0x47   : > { %p3500_p12 = scmp.ne.s32.totalorder %s429_s29, %s3499_s14  ;;  %p3508_p4 = scmp.lt.s32.totalorder %s3499_s14, %s3499_s14 }
  0x49   : > { %p3502_p13 = pnand %p3500_p12, %p3650_p6  ;;  %p3509_p7 = por %p3508_p4, %p3507_p1 }
  0x4b   : > { %p3503_p0 = pneg %p3502_p13 }
  0x4d   : > { %p3510_p8 = pnand %p3509_p7, %p3503_p0 }
  0x4f   : > { %3513 = shalt.err (!%p3510_p8)
}
  0x50   : > { %3325 = dma.hbm_to_vmem [thread:$0]  (!%p3640_p5), %s4082_s11, 6144, %s429_s29, [#allocation13], %s3542_s22, %s3542_s22, %s3543_s23  }
  0x51   : > { %455 = sbr.rel (%p3630_p3) target bundleno = 1573 (0x625), region = 72 }
  0x56   : > { %3519 = dma.done.wait (%p3326_p2), [#allocation5], 6144  }
  0x57   : > { %3521 = vsyncadd (%p3326_p2), [#allocation5], 4294961152 }
  0x58   : > { %3523 = dma.done.wait (%p3326_p2), [#allocation7], 12288  }
  0x59   : > { %3525 = vsyncadd (%p3326_p2), [#allocation7], 4294955008 }
  0x5a   : > { %3527 = dma.done.wait (%p3326_p2), [#allocation10], 12288  }
  0x5b   : > { %3529 = vsyncadd (%p3326_p2), [#allocation10], 4294955008 }
  0x5c   : > { %3531 = dma.done.wait (%p3326_p2), [#allocation13], 6144  }
  0x5d   : > { %3533 = vsyncadd (%p3326_p2), [#allocation13], 4294961152  ;;  %v564_v0 = vld [vmem:[#allocation4 + $0xf8] sm:$0xff]  ;;  %v563_v2 = vld [vmem:[#allocation4 + $0xf0] sm:$0xff]  ;;  %p518_p2 = scmp.lt.s32.totalorder %s3625_s26, 1  ;;  %v3546_v56 = vmov 0.0  }
  0x5e   : > { %v545_v1 = vld [vmem:[#allocation4 + $0x78] sm:$0xff]  ;;  %2652 = vmatprep.subr.mxu0 %v564_v0  ;;  %v544_v3 = vld [vmem:[#allocation4 + $0x70] sm:$0xff]  ;;  %v562_v4 = vld [vmem:[#allocation4 + $0xe8] sm:$0xff]  ;;  %1097 = vst [vmem:[#allocation3] sm:$0xff] %v3546_v56  ;;  %vm3547_vm0 = vmmov 0  }
  0x5f   : > { %2687 = vmatprep.subr.mxu1 %v545_v1  ;;  %2653 = vmatpush3.msra.mxu0 %v564_v0  ;;  %v543_v5 = vld [vmem:[#allocation4 + $0x68] sm:$0xff]  ;;  %v561_v6 = vld [vmem:[#allocation4 + $0xe0] sm:$0xff]  ;;  %v560_v8 = vld [vmem:[#allocation4 + $0xd8] sm:$0xff]  ;;  %s4089_s26 = smov (!%p518_p2, %s3625_s26), 1  ;;  %1098 = vst [vmem:[#allocation3 + $0x8] sm:$0x1] %v3546_v56 }
  0x60   : > { %2688 = vmatpush3.msra.mxu1 %v545_v1  ;;  %2654 = vmatprep.subr.mxu0 %v563_v2  ;;  %v542_v7 = vld [vmem:[#allocation4 + $0x60] sm:$0xff]  ;;  %v541_v9 = vld [vmem:[#allocation4 + $0x58] sm:$0xff]  ;;  %v559_v10 = vld [vmem:[#allocation4 + $0xd0] sm:$0xff]  ;;  %s3282_s27 = smul.u32 24, %s4089_s26  ;;  %s2335_s15 = sshll.u32 %s4089_s26, 3 }
  0x61   : > { %2689 = vmatprep.subr.mxu1 %v544_v3  ;;  %2655 = vmatpush3.msra.mxu0 %v563_v2  ;;  %v540_v11 = vld [vmem:[#allocation4 + $0x50] sm:$0xff]  ;;  %v558_v12 = vld [vmem:[#allocation4 + $0xc8] sm:$0xff]  ;;  %v557_v14 = vld [vmem:[#allocation4 + $0xc0] sm:$0xff]  ;;  %s526_s23 = scalar_lea.vmem %s4084_s13, %s2335_s15 }
  0x62   : > { %2690 = vmatpush3.msra.mxu1 %v544_v3  ;;  %2656 = vmatprep.subr.mxu0 %v562_v4  ;;  %v539_v13 = vld [vmem:[#allocation4 + $0x48] sm:$0xff]  ;;  %v538_v15 = vld [vmem:[#allocation4 + $0x40] sm:$0xff]  ;;  %v556_v16 = vld [vmem:[#allocation4 + $0xb8] sm:$0xff]  ;;  %s3751_s22 = scalar_lea.vmem %s4071_s0, %s3282_s27 }
  0x63   : > { %2691 = vmatprep.subr.mxu1 %v543_v5  ;;  %2657 = vmatpush3.msra.mxu0 %v562_v4  ;;  %v537_v17 = vld [vmem:[#allocation4 + $0x38] sm:$0xff]  ;;  %v555_v18 = vld [vmem:[#allocation4 + $0xb0] sm:$0xff]  ;;  %v554_v20 = vld [vmem:[#allocation4 + $0xa8] sm:$0xff] }
  0x64   : > { %2692 = vmatpush3.msra.mxu1 %v543_v5  ;;  %2658 = vmatprep.subr.mxu0 %v561_v6  ;;  %v536_v19 = vld [vmem:[#allocation4 + $0x30] sm:$0xff]  ;;  %v535_v21 = vld [vmem:[#allocation4 + $0x28] sm:$0xff]  ;;  %v553_v22 = vld [vmem:[#allocation4 + $0xa0] sm:$0xff] }
  0x65   : > { %2693 = vmatprep.subr.mxu1 %v542_v7  ;;  %2659 = vmatpush3.msra.mxu0 %v561_v6  ;;  %v534_v23 = vld [vmem:[#allocation4 + $0x20] sm:$0xff]  ;;  %v552_v24 = vld [vmem:[#allocation4 + $0x98] sm:$0xff]  ;;  %v551_v26 = vld [vmem:[#allocation4 + $0x90] sm:$0xff] }
  0x66   : > { %2694 = vmatpush3.msra.mxu1 %v542_v7  ;;  %2660 = vmatprep.subr.mxu0 %v560_v8  ;;  %v533_v25 = vld [vmem:[#allocation4 + $0x18] sm:$0xff]  ;;  %v532_v27 = vld [vmem:[#allocation4 + $0x10] sm:$0xff]  ;;  %v550_v28 = vld [vmem:[#allocation4 + $0x88] sm:$0xff] }
  0x67   : > { %2695 = vmatprep.subr.mxu1 %v541_v9  ;;  %2661 = vmatpush3.msra.mxu0 %v560_v8  ;;  %v531_v29 = vld [vmem:[#allocation4 + $0x8] sm:$0xff]  ;;  %v549_v30 = vld [vmem:[#allocation4 + $0x80] sm:$0xff]  ;;  %v733_v36 = vld [vmem:[#allocation4 + $0x178] sm:$0xff] }
  0x68   : > { %2696 = vmatpush3.msra.mxu1 %v541_v9  ;;  %2662 = vmatprep.subr.mxu0 %v559_v10  ;;  %v530_v31 = vld [vmem:[#allocation4] sm:$0xff]  ;;  %v547_v34 = vld [vmem:[%s3751_s22 + $0x9] sm:$0xff]  ;;  %v729_v41 = vld [vmem:[#allocation4 + $0x158] sm:$0xff] }
  0x69   : > { %2697 = vmatprep.subr.mxu1 %v540_v11  ;;  %2663 = vmatpush3.msra.mxu0 %v559_v10  ;;  %v546_v32 = vld [vmem:[%s3751_s22 + $0x1] sm:$0xff]  ;;  %v732_v38 = vld [vmem:[#allocation4 + $0x170] sm:$0xff]  ;;  %v725_v45 = vld [vmem:[#allocation4 + $0x138] sm:$0xff] }
  0x6a   : > { %2698 = vmatpush3.msra.mxu1 %v540_v11  ;;  %2664 = vmatprep.subr.mxu0 %v558_v12  ;;  %v528_v33 = vld [vmem:[%s3751_s22] sm:$0xff]  ;;  %v529_v35 = vld [vmem:[%s3751_s22 + $0x8] sm:$0xff]  ;;  %v728_v42 = vld [vmem:[#allocation4 + $0x150] sm:$0xff] }
  0x6b   : > { %2699 = vmatprep.subr.mxu1 %v539_v13  ;;  %2665 = vmatpush3.msra.mxu0 %v558_v12  ;;  %v715_v37 = vld [vmem:[%s3751_s22 + $0x2] sm:$0xff]  ;;  %v724_v46 = vld [vmem:[#allocation4 + $0x130] sm:$0xff]  ;;  %v721_v49 = vld [vmem:[#allocation4 + $0x118] sm:$0xff] }
  0x6c   : > { %2700 = vmatpush3.msra.mxu1 %v539_v13  ;;  %2666 = vmatprep.subr.mxu0 %v557_v14  ;;  %v731_v39 = vld [vmem:[#allocation4 + $0x168] sm:$0xff]  ;;  %v730_v40 = vld [vmem:[#allocation4 + $0x160] sm:$0xff]  ;;  %v720_v50 = vld [vmem:[#allocation4 + $0x110] sm:$0xff] }
  0x6d   : > { %2701 = vmatprep.subr.mxu1 %v538_v15  ;;  %2667 = vmatpush3.msra.mxu0 %v557_v14  ;;  %v727_v43 = vld [vmem:[#allocation4 + $0x148] sm:$0xff]  ;;  %v726_v44 = vld [vmem:[#allocation4 + $0x140] sm:$0xff]  ;;  %v843_v54 = vld [vmem:[#allocation6 + $0x78] sm:$0xff] }
  0x6e   : > { %2702 = vmatpush3.msra.mxu1 %v538_v15  ;;  %2668 = vmatprep.subr.mxu0 %v556_v16  ;;  %v723_v47 = vld [vmem:[#allocation4 + $0x128] sm:$0xff]  ;;  %v722_v48 = vld [vmem:[#allocation4 + $0x120] sm:$0xff]  ;;  %v930_v55 = vld [vmem:[#allocation6 + $0xf8] sm:$0xff] }
  0x6f   : > { %2703 = vmatprep.subr.mxu1 %v537_v17  ;;  %2669 = vmatpush3.msra.mxu0 %v556_v16  ;;  %v719_v51 = vld [vmem:[#allocation4 + $0x108] sm:$0xff]  ;;  %v718_v52 = vld [vmem:[#allocation4 + $0x100] sm:$0xff]  ;;  %v842_v57 = vld [vmem:[#allocation6 + $0x70] sm:$0xff] }
  0x70   : > { %2704 = vmatpush3.msra.mxu1 %v537_v17  ;;  %2670 = vmatprep.subr.mxu0 %v555_v18  ;;  %v716_v53 = vld [vmem:[%s3751_s22 + $0xa] sm:$0xff]  ;;  %v840_v61 = vld [vmem:[#allocation6 + $0x60] sm:$0xff]  ;;  %v839_v63 = vld [vmem:[#allocation6 + $0x58] sm:$0xff] }
  0x71   : > { %2705 = vmatprep.subr.mxu1 %v536_v19  ;;  %2671 = vmatpush3.msra.mxu0 %v555_v18  ;;  %v929_v58 = vld [vmem:[#allocation6 + $0xf0] sm:$0xff]  ;;  %v841_v59 = vld [vmem:[#allocation6 + $0x68] sm:$0xff]  ;;  %v927_v62 = vld [vmem:[#allocation6 + $0xe0] sm:$0xff] }
  0x72   : > { %2706 = vmatpush3.msra.mxu1 %v536_v19  ;;  %2672 = vmatprep.subr.mxu0 %v554_v20  ;;  %v928_v60 = vld [vmem:[#allocation6 + $0xe8] sm:$0xff]  ;;  %v926_v0 = vld [vmem:[#allocation6 + $0xd8] sm:$0xff]  ;;  %v838_v1 = vld [vmem:[#allocation6 + $0x50] sm:$0xff] }
  0x73   : > { %2707 = vmatprep.subr.mxu1 %v535_v21  ;;  %2673 = vmatpush3.msra.mxu0 %v554_v20  ;;  %v925_v2 = vld [vmem:[#allocation6 + $0xd0] sm:$0xff]  ;;  %v837_v3 = vld [vmem:[#allocation6 + $0x48] sm:$0xff]  ;;  %v836_v5 = vld [vmem:[#allocation6 + $0x40] sm:$0xff] }
  0x74   : > { %2708 = vmatpush3.msra.mxu1 %v535_v21  ;;  %2674 = vmatprep.subr.mxu0 %v553_v22  ;;  %v924_v4 = vld [vmem:[#allocation6 + $0xc8] sm:$0xff]  ;;  %v923_v6 = vld [vmem:[#allocation6 + $0xc0] sm:$0xff]  ;;  %v835_v7 = vld [vmem:[#allocation6 + $0x38] sm:$0xff] }
  0x75   : > { %2709 = vmatprep.subr.mxu1 %v534_v23  ;;  %2675 = vmatpush3.msra.mxu0 %v553_v22  ;;  %v922_v8 = vld [vmem:[#allocation6 + $0xb8] sm:$0xff]  ;;  %v834_v9 = vld [vmem:[#allocation6 + $0x30] sm:$0xff]  ;;  %v833_v11 = vld [vmem:[#allocation6 + $0x28] sm:$0xff] }
  0x76   : > { %2710 = vmatpush3.msra.mxu1 %v534_v23  ;;  %2676 = vmatprep.subr.mxu0 %v552_v24  ;;  %v921_v10 = vld [vmem:[#allocation6 + $0xb0] sm:$0xff]  ;;  %v920_v12 = vld [vmem:[#allocation6 + $0xa8] sm:$0xff]  ;;  %v832_v13 = vld [vmem:[#allocation6 + $0x20] sm:$0xff] }
  0x77   : > { %2711 = vmatprep.subr.mxu1 %v533_v25  ;;  %2677 = vmatpush3.msra.mxu0 %v552_v24  ;;  %v919_v14 = vld [vmem:[#allocation6 + $0xa0] sm:$0xff]  ;;  %v831_v15 = vld [vmem:[#allocation6 + $0x18] sm:$0xff]  ;;  %v830_v17 = vld [vmem:[#allocation6 + $0x10] sm:$0xff]  ;;  %v3548_v24 = vmov 0  }
  0x78   : > { %2712 = vmatpush3.msra.mxu1 %v533_v25  ;;  %2678 = vmatprep.subr.mxu0 %v551_v26  ;;  %v918_v16 = vld [vmem:[#allocation6 + $0x98] sm:$0xff]  ;;  %v917_v18 = vld [vmem:[#allocation6 + $0x90] sm:$0xff]  ;;  %v829_v19 = vld [vmem:[#allocation6 + $0x8] sm:$0xff] }
  0x79   : > { %2713 = vmatprep.subr.mxu1 %v532_v27  ;;  %2679 = vmatpush3.msra.mxu0 %v551_v26  ;;  %v916_v20 = vld [vmem:[#allocation6 + $0x88] sm:$0xff]  ;;  %v828_v21 = vld [vmem:[#allocation6] sm:$0xff] }
  0x7a   : > { %2714 = vmatpush3.msra.mxu1 %v532_v27  ;;  %2680 = vmatprep.subr.mxu0 %v550_v28  ;;  %v915_v22 = vld [vmem:[#allocation6 + $0x80] sm:$0xff] }
  0x7b   : > { %2715 = vmatprep.subr.mxu1 %v531_v29  ;;  %2681 = vmatpush3.msra.mxu0 %v550_v28  ;;  %v1090_v23 = vld [vmem:[%s4075_s4] sm:$0x7f] }
  0x7c   : > { %2716 = vmatpush3.msra.mxu1 %v531_v29  ;;  %2682 = vmatprep.subr.mxu0 %v549_v30 }
  0x7d   : > { %2717 = vmatprep.subr.mxu1 %v530_v31  ;;  %2683 = vmatpush3.msra.mxu0 %v549_v30  ;;  %v2336_v30 = vld [vmem:[%s4073_s2] ss:$0 sm:$0xff] }
  0x7e   : > { %2684 = vmatprep.mubr.f32.mxu0 %v546_v32  ;;  %2718 = vmatpush3.msra.mxu1 %v530_v31 }
  0x7f   : > { %2719 = vmatprep.mubr.f32.mxu1 %v528_v33  ;;  %2685 = vmatmul.mubr.f32.vlgmr.msra.gmra.mxu0 %v547_v34 }
  0x80   : > { %2720 = vmatmul.mubr.f32.vlgmr.msra.gmra.mxu1 %v529_v35  ;;  %2722 = vmatprep.subr.mxu0 %v733_v36 }
  0x81   : > { %2754 = vmatprep.mubr.f32.mxu0 %v715_v37  ;;  %2723 = vmatpush3.msra.mxu0 %v733_v36 }
  0x82   : > { %2724 = vmatprep.subr.mxu0 %v732_v38  ;;  %2757 = vmatprep.subr.mxu1 %v3546_v56 }
  0x83   : > { %2725 = vmatpush3.msra.mxu0 %v732_v38  ;;  %2758 = vmatpush3.msra.mxu1 %v843_v54  ;;  %v1007_v54 = vld [vmem:[#allocation6 + $0x120] sm:$0xff] }
  0x84   : > { %2726 = vmatprep.subr.mxu0 %v731_v39  ;;  %2759 = vmatprep.subr.mxu1 %v3546_v56 }
  0x85   : > { %2727 = vmatpush3.msra.mxu0 %v731_v39  ;;  %2760 = vmatpush3.msra.mxu1 %v842_v57  ;;  %v1005_v57 = vld [vmem:[#allocation6 + $0x110] sm:$0xff] }
  0x86   : > { %2728 = vmatprep.subr.mxu0 %v730_v40  ;;  %2761 = vmatprep.subr.mxu1 %v3546_v56 }
  0x87   : > { %2729 = vmatpush3.msra.mxu0 %v730_v40  ;;  %2762 = vmatpush3.msra.mxu1 %v841_v59  ;;  %v1003_v59 = vld [vmem:[#allocation6 + $0x100] sm:$0xff] }
  0x88   : > { %2730 = vmatprep.subr.mxu0 %v729_v41  ;;  %2763 = vmatprep.subr.mxu1 %v3546_v56 }
  0x89   : > { %2731 = vmatpush3.msra.mxu0 %v729_v41  ;;  %2764 = vmatpush3.msra.mxu1 %v840_v61  ;;  %v1118_v61 = vld [vmem:[#allocation8 + $0x78] sm:$0xff] }
  0x8a   : > { %2732 = vmatprep.subr.mxu0 %v728_v42  ;;  %2765 = vmatprep.subr.mxu1 %v3546_v56 }
  0x8b   : > { %2733 = vmatpush3.msra.mxu0 %v728_v42  ;;  %2766 = vmatpush3.msra.mxu1 %v839_v63  ;;  %v1117_v63 = vld [vmem:[#allocation8 + $0x70] sm:$0xff] }
  0x8c   : > { %2734 = vmatprep.subr.mxu0 %v727_v43  ;;  %2767 = vmatprep.subr.mxu1 %v3546_v56 }
  0x8d   : > { %2735 = vmatpush3.msra.mxu0 %v727_v43  ;;  %2768 = vmatpush3.msra.mxu1 %v838_v1  ;;  %v1018_v43 = vld [vmem:[#allocation6 + $0x178] sm:$0xff]  ;;  %v1116_v1 = vld [vmem:[#allocation8 + $0x68] sm:$0xff] }
  0x8e   : > { %2736 = vmatprep.subr.mxu0 %v726_v44  ;;  %2769 = vmatprep.subr.mxu1 %v3546_v56 }
  0x8f   : > { %2737 = vmatpush3.msra.mxu0 %v726_v44  ;;  %2770 = vmatpush3.msra.mxu1 %v837_v3  ;;  %v1017_v44 = vld [vmem:[#allocation6 + $0x170] sm:$0xff]  ;;  %v1115_v3 = vld [vmem:[#allocation8 + $0x60] sm:$0xff] }
  0x90   : > { %2738 = vmatprep.subr.mxu0 %v725_v45  ;;  %2771 = vmatprep.subr.mxu1 %v3546_v56 }
  0x91   : > { %2739 = vmatpush3.msra.mxu0 %v725_v45  ;;  %2772 = vmatpush3.msra.mxu1 %v836_v5  ;;  %v1016_v45 = vld [vmem:[#allocation6 + $0x168] sm:$0xff]  ;;  %v1114_v5 = vld [vmem:[#allocation8 + $0x58] sm:$0xff] }
  0x92   : > { %2740 = vmatprep.subr.mxu0 %v724_v46  ;;  %2773 = vmatprep.subr.mxu1 %v3546_v56 }
  0x93   : > { %2741 = vmatpush3.msra.mxu0 %v724_v46  ;;  %2774 = vmatpush3.msra.mxu1 %v835_v7  ;;  %v1015_v46 = vld [vmem:[#allocation6 + $0x160] sm:$0xff]  ;;  %v1113_v7 = vld [vmem:[#allocation8 + $0x50] sm:$0xff] }
  0x94   : > { %2742 = vmatprep.subr.mxu0 %v723_v47  ;;  %2775 = vmatprep.subr.mxu1 %v3546_v56 }
  0x95   : > { %2743 = vmatpush3.msra.mxu0 %v723_v47  ;;  %2776 = vmatpush3.msra.mxu1 %v834_v9  ;;  %v1014_v47 = vld [vmem:[#allocation6 + $0x158] sm:$0xff]  ;;  %v1112_v9 = vld [vmem:[#allocation8 + $0x48] sm:$0xff] }
  0x96   : > { %2744 = vmatprep.subr.mxu0 %v722_v48  ;;  %2777 = vmatprep.subr.mxu1 %v3546_v56 }
  0x97   : > { %2745 = vmatpush3.msra.mxu0 %v722_v48  ;;  %2778 = vmatpush3.msra.mxu1 %v833_v11  ;;  %v1013_v48 = vld [vmem:[#allocation6 + $0x150] sm:$0xff]  ;;  %v1111_v11 = vld [vmem:[#allocation8 + $0x40] sm:$0xff] }
  0x98   : > { %2746 = vmatprep.subr.mxu0 %v721_v49  ;;  %2779 = vmatprep.subr.mxu1 %v3546_v56 }
  0x99   : > { %2747 = vmatpush3.msra.mxu0 %v721_v49  ;;  %2780 = vmatpush3.msra.mxu1 %v832_v13  ;;  %v1012_v49 = vld [vmem:[#allocation6 + $0x148] sm:$0xff]  ;;  %v1110_v13 = vld [vmem:[#allocation8 + $0x38] sm:$0xff] }
  0x9a   : > { %2748 = vmatprep.subr.mxu0 %v720_v50  ;;  %2781 = vmatprep.subr.mxu1 %v3546_v56 }
  0x9b   : > { %2749 = vmatpush3.msra.mxu0 %v720_v50  ;;  %2782 = vmatpush3.msra.mxu1 %v831_v15  ;;  %v1011_v50 = vld [vmem:[#allocation6 + $0x140] sm:$0xff]  ;;  %v1109_v15 = vld [vmem:[#allocation8 + $0x30] sm:$0xff] }
  0x9c   : > { %2750 = vmatprep.subr.mxu0 %v719_v51  ;;  %2783 = vmatprep.subr.mxu1 %v3546_v56 }
  0x9d   : > { %2751 = vmatpush3.msra.mxu0 %v719_v51  ;;  %2784 = vmatpush3.msra.mxu1 %v830_v17  ;;  %v1010_v51 = vld [vmem:[#allocation6 + $0x138] sm:$0xff]  ;;  %v1108_v17 = vld [vmem:[#allocation8 + $0x28] sm:$0xff] }
  0x9e   : > { %2752 = vmatprep.subr.mxu0 %v718_v52  ;;  %2785 = vmatprep.subr.mxu1 %v3546_v56 }
  0x9f   : > { %2753 = vmatpush3.msra.mxu0 %v718_v52  ;;  %2786 = vmatpush3.msra.mxu1 %v829_v19  ;;  %v1009_v52 = vld [vmem:[#allocation6 + $0x130] sm:$0xff]  ;;  %v1107_v19 = vld [vmem:[#allocation8 + $0x20] sm:$0xff] }
  0xa0   : > { %2755 = vmatmul.mubr.f32.vlgmr.msra.gmra.mxu0 %v716_v53  ;;  %2792 = vmatprep.subr.mxu0 %v3546_v56  ;;  %v1008_v53 = vld [vmem:[#allocation6 + $0x128] sm:$0xff] }
  0xa1   : > { %2793 = vmatpush3.msra.mxu0 %v930_v55  ;;  %2787 = vmatprep.subr.mxu1 %v3546_v56  ;;  %v1006_v55 = vld [vmem:[#allocation6 + $0x118] sm:$0xff] }
  0xa2   : > { %2794 = vmatprep.subr.mxu0 %v3546_v56  ;;  %2788 = vmatpush3.msra.mxu1 %v828_v21  ;;  %v1106_v21 = vld [vmem:[#allocation8 + $0x18] sm:$0xff] }
  0xa3   : > { %2795 = vmatpush3.msra.mxu0 %v929_v58  ;;  %2789 = vmatprep.mubr.msk.f32.mxu1 %vm3547_vm0, %v3546_v56  ;;  %v1004_v58 = vld [vmem:[#allocation6 + $0x108] sm:$0xff] }
  0xa4   : > { %2796 = vmatprep.subr.mxu0 %v3546_v56  ;;  %2824 = vmatprep.mubr.msk.f32.mxu0 %vm3547_vm0, %v3546_v56 }
  0xa5   : > { %2797 = vmatpush3.msra.mxu0 %v928_v60  ;;  %2827 = vmatprep.subr.mxu1 %v3546_v56  ;;  %v1136_v60 = vld [vmem:[#allocation8 + $0xf8] sm:$0xff] }
  0xa6   : > { %2798 = vmatprep.subr.mxu0 %v3546_v56  ;;  %3357 = vset.pattern.permute.xlu0 %v3548_v24  ;;  %v1122_v24 = vld [vmem:[#allocation8 + $0x88] sm:$0xff] }
  0xa7   : > { %2799 = vmatpush3.msra.mxu0 %v927_v62  ;;  %1093 = vperm.xlu0 %3357, %v1090_v23   ;;  %v1135_v62 = vld [vmem:[#allocation8 + $0xf0] sm:$0xff] }
  0xa8   : > { %2800 = vmatprep.subr.mxu0 %v3546_v56  ;;  %v1105_v23 = vld [vmem:[#allocation8 + $0x10] sm:$0xff] }
  0xa9   : > { %2801 = vmatpush3.msra.mxu0 %v926_v0  ;;  %v1134_v0 = vld [vmem:[#allocation8 + $0xe8] sm:$0xff] }
  0xaa   : > { %2802 = vmatprep.subr.mxu0 %v3546_v56 }
  0xab   : > { %2803 = vmatpush3.msra.mxu0 %v925_v2  ;;  %v1133_v2 = vld [vmem:[#allocation8 + $0xe0] sm:$0xff] }
  0xac   : > { %2804 = vmatprep.subr.mxu0 %v3546_v56 }
  0xad   : > { %2805 = vmatpush3.msra.mxu0 %v924_v4  ;;  %v1132_v4 = vld [vmem:[#allocation8 + $0xd8] sm:$0xff] }
  0xae   : > { %2806 = vmatprep.subr.mxu0 %v3546_v56 }
  0xaf   : > { %2807 = vmatpush3.msra.mxu0 %v923_v6  ;;  %v1131_v6 = vld [vmem:[#allocation8 + $0xd0] sm:$0xff] }
  0xb0   : > { %2808 = vmatprep.subr.mxu0 %v3546_v56 }
  0xb1   : > { %2809 = vmatpush3.msra.mxu0 %v922_v8  ;;  %v1130_v8 = vld [vmem:[#allocation8 + $0xc8] sm:$0xff] }
  0xb2   : > { %2810 = vmatprep.subr.mxu0 %v3546_v56 }
  0xb3   : > { %2811 = vmatpush3.msra.mxu0 %v921_v10  ;;  %v1129_v10 = vld [vmem:[#allocation8 + $0xc0] sm:$0xff] }
  0xb4   : > { %2812 = vmatprep.subr.mxu0 %v3546_v56 }
  0xb5   : > { %2813 = vmatpush3.msra.mxu0 %v920_v12  ;;  %v1128_v12 = vld [vmem:[#allocation8 + $0xb8] sm:$0xff] }
  0xb6   : > { %2814 = vmatprep.subr.mxu0 %v3546_v56 }
  0xb7   : > { %2815 = vmatpush3.msra.mxu0 %v919_v14  ;;  %v1127_v14 = vld [vmem:[#allocation8 + $0xb0] sm:$0xff] }
  0xb8   : > { %2816 = vmatprep.subr.mxu0 %v3546_v56 }
  0xb9   : > { %2817 = vmatpush3.msra.mxu0 %v918_v16  ;;  %v1126_v16 = vld [vmem:[#allocation8 + $0xa8] sm:$0xff] }
  0xba   : > { %2818 = vmatprep.subr.mxu0 %v3546_v56 }
  0xbb   : > { %2819 = vmatpush3.msra.mxu0 %v917_v18  ;;  %v1125_v18 = vld [vmem:[#allocation8 + $0xa0] sm:$0xff] }
  0xbc   : > { %2820 = vmatprep.subr.mxu0 %v3546_v56 }
  0xbd   : > { %2821 = vmatpush3.msra.mxu0 %v916_v20  ;;  %v1124_v20 = vld [vmem:[#allocation8 + $0x98] sm:$0xff] }
  0xbe   : > { %2822 = vmatprep.subr.mxu0 %v3546_v56 }
  0xbf   : > { %2823 = vmatpush3.msra.mxu0 %v915_v22  ;;  %v1123_v22 = vld [vmem:[#allocation8 + $0x90] sm:$0xff] }
  0xc0   : > { %2862 = vmatprep.subr.mxu0 %v3546_v56 }
 0x13f   : > { %v2686_v25 = vpop.f32.mrf.mxu0 }
 0x140   : > { %v2721_v26 = vpop.f32.mrf.mxu1 }
 0x141   : > { %v631_v27 = vpop.f32.mrf.mxu0  ;;  %v712_v29 = vadd.f32 %v2721_v26, %v2686_v25  ;;  %v1104_v25 = vld [vmem:[#allocation8 + $0x8] sm:$0xff]  ;;  %v1121_v26 = vld [vmem:[#allocation8 + $0x80] sm:$0xff] }
 0x142   : > { %v706_v28 = vpop.f32.mrf.mxu1 }
 0x143   : > { %v707_v32 = vadd.f32 %v706_v28, %v631_v27  ;;  %v1103_v27 = vld [vmem:[#allocation8] sm:$0xff] }
 0x160   : > { %v2756_v31 = vpop.f32.mrf.mxu0 }
 0x161   : > { %v810_v33 = vadd.f32 %v2756_v31, %v712_v29 }
 0x162   : > { %v800_v34 = vpop.f32.mrf.mxu0 }
 0x163   : > { %v818_v35 = vadd.f32 %v2336_v30, %v810_v33  ;;  %v809_v36 = vadd.f32 %v800_v34, %v707_v32  ;;  %v3859_v34 = vpop.permute.xlu0 %1093 }
 0x165   : > { %820 = vst [vmem:[#allocation2 + $0x8] sm:$0xff] %v818_v35  ;;  %v817_v37 = vadd.f32 %v2336_v30, %v809_v36 }
 0x167   : > { %819 = vst [vmem:[#allocation2] sm:$0xff] %v817_v37 }
 0x16e   : > { %v821_v38 = vld [vmem:[#allocation2] ss:$2 sm:$0x7f]  ;;  %v823_v39 = vld [vmem:[#allocation2 + $0x1] ss:$2 sm:$0x7f] }
 0x16f   : > { %v824_v40 = vmax.f32 %v821_v38, %v823_v39  ;;  %v826_v41 = vld [vmem:[#allocation2 + $0x2] ss:$2 sm:$0x7f]  ;;  %v1294_v39 = vld [vmem:[#allocation8 + $0x178] sm:$0xff] }
 0x171   : > { %v827_v42 = vmax.f32 %v824_v40, %v826_v41 }
 0x173   : > { %2790 = vmatmul.mubr.f32.vlgmr.msra.gmra.mxu1 %v827_v42  ;;  %2825 = vmatmul.mubr.f32.vlgmr.msra.gmra.mxu0 %v827_v42 }
 0x174   : > { %2828 = vmatpush3.msra.mxu1 %v1018_v43  ;;  %2859 = vmatprep.mubr.msk.f32.mxu1 %vm3547_vm0, %v3546_v56  ;;  %v1292_v43 = vld [vmem:[#allocation8 + $0x168] sm:$0xff] }
 0x175   : > { %2829 = vmatprep.subr.mxu1 %v3546_v56  ;;  %2894 = vmatprep.mubr.msk.f32.mxu0 %vm3547_vm0, %v3546_v56 }
 0x176   : > { %2830 = vmatpush3.msra.mxu1 %v1017_v44  ;;  %2863 = vmatpush3.msra.mxu0 %v1136_v60  ;;  %v1291_v44 = vld [vmem:[#allocation8 + $0x160] sm:$0xff]  ;;  %v1393_v60 = vld [vmem:[#allocation9 + $0x78] sm:$0xff] }
 0x177   : > { %2831 = vmatprep.subr.mxu1 %v3546_v56  ;;  %2864 = vmatprep.subr.mxu0 %v3546_v56 }
 0x178   : > { %2832 = vmatpush3.msra.mxu1 %v1016_v45  ;;  %2865 = vmatpush3.msra.mxu0 %v1135_v62  ;;  %v1290_v45 = vld [vmem:[#allocation8 + $0x158] sm:$0xff]  ;;  %v1392_v62 = vld [vmem:[#allocation9 + $0x70] sm:$0xff] }
 0x179   : > { %2833 = vmatprep.subr.mxu1 %v3546_v56  ;;  %2866 = vmatprep.subr.mxu0 %v3546_v56 }
 0x17a   : > { %2834 = vmatpush3.msra.mxu1 %v1015_v46  ;;  %2867 = vmatpush3.msra.mxu0 %v1134_v0  ;;  %v1289_v46 = vld [vmem:[#allocation8 + $0x150] sm:$0xff]  ;;  %v1391_v0 = vld [vmem:[#allocation9 + $0x68] sm:$0xff] }
 0x17b   : > { %2835 = vmatprep.subr.mxu1 %v3546_v56  ;;  %2868 = vmatprep.subr.mxu0 %v3546_v56 }
 0x17c   : > { %2836 = vmatpush3.msra.mxu1 %v1014_v47  ;;  %2869 = vmatpush3.msra.mxu0 %v1133_v2  ;;  %v1288_v47 = vld [vmem:[#allocation8 + $0x148] sm:$0xff]  ;;  %v1390_v2 = vld [vmem:[#allocation9 + $0x60] sm:$0xff] }
 0x17d   : > { %2837 = vmatprep.subr.mxu1 %v3546_v56  ;;  %2870 = vmatprep.subr.mxu0 %v3546_v56 }
 0x17e   : > { %2838 = vmatpush3.msra.mxu1 %v1013_v48  ;;  %2871 = vmatpush3.msra.mxu0 %v1132_v4  ;;  %v1287_v48 = vld [vmem:[#allocation8 + $0x140] sm:$0xff]  ;;  %v1389_v4 = vld [vmem:[#allocation9 + $0x58] sm:$0xff] }
 0x17f   : > { %2839 = vmatprep.subr.mxu1 %v3546_v56  ;;  %2872 = vmatprep.subr.mxu0 %v3546_v56 }
 0x180   : > { %2840 = vmatpush3.msra.mxu1 %v1012_v49  ;;  %2873 = vmatpush3.msra.mxu0 %v1131_v6  ;;  %v1286_v49 = vld [vmem:[#allocation8 + $0x138] sm:$0xff]  ;;  %v1388_v6 = vld [vmem:[#allocation9 + $0x50] sm:$0xff] }
 0x181   : > { %2841 = vmatprep.subr.mxu1 %v3546_v56  ;;  %2874 = vmatprep.subr.mxu0 %v3546_v56 }
 0x182   : > { %2842 = vmatpush3.msra.mxu1 %v1011_v50  ;;  %2875 = vmatpush3.msra.mxu0 %v1130_v8  ;;  %v1285_v50 = vld [vmem:[#allocation8 + $0x130] sm:$0xff]  ;;  %v1387_v8 = vld [vmem:[#allocation9 + $0x48] sm:$0xff] }
 0x183   : > { %2843 = vmatprep.subr.mxu1 %v3546_v56  ;;  %2876 = vmatprep.subr.mxu0 %v3546_v56 }
 0x184   : > { %2844 = vmatpush3.msra.mxu1 %v1010_v51  ;;  %2877 = vmatpush3.msra.mxu0 %v1129_v10  ;;  %v1284_v51 = vld [vmem:[#allocation8 + $0x128] sm:$0xff]  ;;  %v1386_v10 = vld [vmem:[#allocation9 + $0x40] sm:$0xff] }
 0x185   : > { %2845 = vmatprep.subr.mxu1 %v3546_v56  ;;  %2878 = vmatprep.subr.mxu0 %v3546_v56 }
 0x186   : > { %2846 = vmatpush3.msra.mxu1 %v1009_v52  ;;  %2879 = vmatpush3.msra.mxu0 %v1128_v12  ;;  %v1283_v52 = vld [vmem:[#allocation8 + $0x120] sm:$0xff]  ;;  %v1385_v12 = vld [vmem:[#allocation9 + $0x38] sm:$0xff] }
 0x187   : > { %2847 = vmatprep.subr.mxu1 %v3546_v56  ;;  %2880 = vmatprep.subr.mxu0 %v3546_v56 }
 0x188   : > { %2848 = vmatpush3.msra.mxu1 %v1008_v53  ;;  %2881 = vmatpush3.msra.mxu0 %v1127_v14  ;;  %v1282_v53 = vld [vmem:[#allocation8 + $0x118] sm:$0xff]  ;;  %v1384_v14 = vld [vmem:[#allocation9 + $0x30] sm:$0xff] }
 0x189   : > { %2849 = vmatprep.subr.mxu1 %v3546_v56  ;;  %2882 = vmatprep.subr.mxu0 %v3546_v56 }
 0x18a   : > { %2850 = vmatpush3.msra.mxu1 %v1007_v54  ;;  %2883 = vmatpush3.msra.mxu0 %v1126_v16  ;;  %v1281_v54 = vld [vmem:[#allocation8 + $0x110] sm:$0xff]  ;;  %v1383_v16 = vld [vmem:[#allocation9 + $0x28] sm:$0xff] }
 0x18b   : > { %2851 = vmatprep.subr.mxu1 %v3546_v56  ;;  %2884 = vmatprep.subr.mxu0 %v3546_v56 }
 0x18c   : > { %2852 = vmatpush3.msra.mxu1 %v1006_v55  ;;  %2885 = vmatpush3.msra.mxu0 %v1125_v18  ;;  %v1280_v55 = vld [vmem:[#allocation8 + $0x108] sm:$0xff]  ;;  %v1382_v18 = vld [vmem:[#allocation9 + $0x20] sm:$0xff] }
 0x18d   : > { %2853 = vmatprep.subr.mxu1 %v3546_v56  ;;  %2886 = vmatprep.subr.mxu0 %v3546_v56 }
 0x18e   : > { %2854 = vmatpush3.msra.mxu1 %v1005_v57  ;;  %2887 = vmatpush3.msra.mxu0 %v1124_v20  ;;  %v1279_v57 = vld [vmem:[#allocation8 + $0x100] sm:$0xff]  ;;  %v1381_v20 = vld [vmem:[#allocation9 + $0x18] sm:$0xff] }
 0x18f   : > { %2855 = vmatprep.subr.mxu1 %v3546_v56  ;;  %2888 = vmatprep.subr.mxu0 %v3546_v56 }
 0x190   : > { %2856 = vmatpush3.msra.mxu1 %v1004_v58  ;;  %2889 = vmatpush3.msra.mxu0 %v1123_v22  ;;  %v1380_v22 = vld [vmem:[#allocation9 + $0x10] sm:$0xff] }
 0x191   : > { %2857 = vmatprep.subr.mxu1 %v3546_v56  ;;  %2890 = vmatprep.subr.mxu0 %v3546_v56 }
 0x192   : > { %2858 = vmatpush3.msra.mxu1 %v1003_v59  ;;  %2891 = vmatpush3.msra.mxu0 %v1122_v24  ;;  %v1411_v59 = vld [vmem:[#allocation9 + $0xf8] sm:$0xff]  ;;  %v1379_v24 = vld [vmem:[#allocation9 + $0x8] sm:$0xff] }
 0x193   : > { %2860 = vmatmul.mubr.f32.vlgmr.msra.gmra.mxu1 %v827_v42  ;;  %2897 = vmatprep.subr.mxu1 %v3546_v56  ;;  %v1293_v42 = vld [vmem:[#allocation8 + $0x170] sm:$0xff] }
 0x194   : > { %2929 = vmatprep.mubr.msk.f32.mxu1 %vm3547_vm0, %v3546_v56  ;;  %2898 = vmatpush3.msra.mxu1 %v1118_v61  ;;  %v1410_v61 = vld [vmem:[#allocation9 + $0xf0] sm:$0xff] }
 0x195   : > { %2899 = vmatprep.subr.mxu1 %v3546_v56  ;;  %2892 = vmatprep.subr.mxu0 %v3546_v56 }
 0x196   : > { %2900 = vmatpush3.msra.mxu1 %v1117_v63  ;;  %2893 = vmatpush3.msra.mxu0 %v1121_v26  ;;  %v1409_v63 = vld [vmem:[#allocation9 + $0xe8] sm:$0xff]  ;;  %v1378_v26 = vld [vmem:[#allocation9] sm:$0xff] }
 0x197   : > { %2901 = vmatprep.subr.mxu1 %v3546_v56  ;;  %2932 = vmatprep.subr.mxu0 %v3546_v56 }
 0x198   : > { %2902 = vmatpush3.msra.mxu1 %v1116_v1  ;;  %v1408_v1 = vld [vmem:[#allocation9 + $0xe0] sm:$0xff] }
 0x199   : > { %2903 = vmatprep.subr.mxu1 %v3546_v56 }
 0x19a   : > { %2904 = vmatpush3.msra.mxu1 %v1115_v3  ;;  %v1407_v3 = vld [vmem:[#allocation9 + $0xd8] sm:$0xff] }
 0x19b   : > { %2905 = vmatprep.subr.mxu1 %v3546_v56 }
 0x19c   : > { %2906 = vmatpush3.msra.mxu1 %v1114_v5  ;;  %v1406_v5 = vld [vmem:[#allocation9 + $0xd0] sm:$0xff] }
 0x19d   : > { %2907 = vmatprep.subr.mxu1 %v3546_v56 }
 0x19e   : > { %2908 = vmatpush3.msra.mxu1 %v1113_v7  ;;  %v1405_v7 = vld [vmem:[#allocation9 + $0xc8] sm:$0xff] }
 0x19f   : > { %2909 = vmatprep.subr.mxu1 %v3546_v56 }
 0x1a0   : > { %2910 = vmatpush3.msra.mxu1 %v1112_v9  ;;  %v1404_v9 = vld [vmem:[#allocation9 + $0xc0] sm:$0xff] }
 0x1a1   : > { %2911 = vmatprep.subr.mxu1 %v3546_v56 }
 0x1a2   : > { %2912 = vmatpush3.msra.mxu1 %v1111_v11  ;;  %v1403_v11 = vld [vmem:[#allocation9 + $0xb8] sm:$0xff] }
 0x1a3   : > { %2913 = vmatprep.subr.mxu1 %v3546_v56 }
 0x1a4   : > { %2914 = vmatpush3.msra.mxu1 %v1110_v13  ;;  %v1402_v13 = vld [vmem:[#allocation9 + $0xb0] sm:$0xff] }
 0x1a5   : > { %2915 = vmatprep.subr.mxu1 %v3546_v56 }
 0x1a6   : > { %2916 = vmatpush3.msra.mxu1 %v1109_v15  ;;  %v1401_v15 = vld [vmem:[#allocation9 + $0xa8] sm:$0xff] }
 0x1a7   : > { %2917 = vmatprep.subr.mxu1 %v3546_v56 }
 0x1a8   : > { %2918 = vmatpush3.msra.mxu1 %v1108_v17  ;;  %v1400_v17 = vld [vmem:[#allocation9 + $0xa0] sm:$0xff] }
 0x1a9   : > { %2919 = vmatprep.subr.mxu1 %v3546_v56 }
 0x1aa   : > { %2920 = vmatpush3.msra.mxu1 %v1107_v19  ;;  %v1399_v19 = vld [vmem:[#allocation9 + $0x98] sm:$0xff] }
 0x1ab   : > { %2921 = vmatprep.subr.mxu1 %v3546_v56 }
 0x1ac   : > { %2922 = vmatpush3.msra.mxu1 %v1106_v21  ;;  %v1398_v21 = vld [vmem:[#allocation9 + $0x90] sm:$0xff] }
 0x1ad   : > { %2923 = vmatprep.subr.mxu1 %v3546_v56 }
 0x1ae   : > { %2924 = vmatpush3.msra.mxu1 %v1105_v23  ;;  %v1397_v23 = vld [vmem:[#allocation9 + $0x88] sm:$0xff] }
 0x1af   : > { %2925 = vmatprep.subr.mxu1 %v3546_v56 }
 0x1b0   : > { %2926 = vmatpush3.msra.mxu1 %v1104_v25  ;;  %v1396_v25 = vld [vmem:[#allocation9 + $0x80] sm:$0xff] }
 0x1b1   : > { %2927 = vmatprep.subr.mxu1 %v3546_v56 }
 0x1b2   : > { %2928 = vmatpush3.msra.mxu1 %v1103_v27 }
 0x1b3   : > { %2967 = vmatprep.subr.mxu1 %v3546_v56 }
 0x233   : > { %v910_v28 = vpop.f32.mrf.mxu1  ;;  %v997_v29 = vpop.f32.mrf.mxu0 }
 0x234   : > { %v1001_v32 = vmax.f32 %v910_v28, %v997_v29 }
 0x235   : > { %v2791_v30 = vpop.f32.mrf.mxu1  ;;  %v2826_v31 = vpop.f32.mrf.mxu0 }
 0x253   : > { %v1085_v33 = vpop.f32.mrf.mxu1 }
 0x254   : > { %v1089_v35 = vmax.f32 %v1001_v32, %v1085_v33  ;;  %v2337_v32 = vld [vmem:[%s4077_s6] ss:$0 sm:$0xff] }
 0x255   : > { %v2861_v36 = vpop.f32.mrf.mxu1 }
 0x256   : > { %v3862_v37 = vmul.f32 %v3859_v34, %v1089_v35 }
 0x258   : > { %v1099_v38 = vmax.f32 %v3862_v37, 0.0 }
 0x25a   : > { %1100 = vst [vmem:[#allocation3 + $0x1] sm:$0x7f] %v1099_v38 }
 0x261   : > { %v1119_v40 = vld [vmem:[#allocation3 + $0x1] sm:$0x7f] }
 0x262   : > { %v1102_v41 = vld [vmem:[#allocation3] sm:$0x7f]  ;;  %2895 = vmatmul.mubr.f32.vlgmr.msra.gmra.mxu0 %v1119_v40 }
 0x263   : > { %2930 = vmatmul.mubr.f32.vlgmr.msra.gmra.mxu1 %v1102_v41  ;;  %2933 = vmatpush3.msra.mxu0 %v1294_v39  ;;  %v1277_v58 = vld [vmem:[#allocation3 + $0x2] sm:$0x7f] }
 0x264   : > { %2964 = vmatprep.mubr.msk.f32.mxu0 %vm3547_vm0, %v3546_v56  ;;  %2934 = vmatprep.subr.mxu0 %v3546_v56  ;;  %v1569_v41 = vld [vmem:[#allocation9 + $0x178] sm:$0xff] }
 0x265   : > { %2999 = vmatprep.mubr.msk.f32.mxu1 %vm3547_vm0, %v3546_v56  ;;  %2935 = vmatpush3.msra.mxu0 %v1293_v42 }
 0x266   : > { %2936 = vmatprep.subr.mxu0 %v3546_v56  ;;  %2968 = vmatpush3.msra.mxu1 %v1411_v59  ;;  %v1554_v59 = vld [vmem:[#allocation9 + $0x100] sm:$0xff] }
 0x267   : > { %2937 = vmatpush3.msra.mxu0 %v1292_v43  ;;  %2969 = vmatprep.subr.mxu1 %v3546_v56 }
 0x268   : > { %2938 = vmatprep.subr.mxu0 %v3546_v56  ;;  %2970 = vmatpush3.msra.mxu1 %v1410_v61  ;;  %v1688_v61 = vld [vmem:[#allocation11 + $0xf8] sm:$0xff] }
 0x269   : > { %2939 = vmatpush3.msra.mxu0 %v1291_v44  ;;  %2971 = vmatprep.subr.mxu1 %v3546_v56  ;;  %v1568_v44 = vld [vmem:[#allocation9 + $0x170] sm:$0xff] }
 0x26a   : > { %2940 = vmatprep.subr.mxu0 %v3546_v56  ;;  %2972 = vmatpush3.msra.mxu1 %v1409_v63  ;;  %v1687_v63 = vld [vmem:[#allocation11 + $0xf0] sm:$0xff] }
 0x26b   : > { %2941 = vmatpush3.msra.mxu0 %v1290_v45  ;;  %2973 = vmatprep.subr.mxu1 %v3546_v56  ;;  %v1567_v45 = vld [vmem:[#allocation9 + $0x168] sm:$0xff] }
 0x26c   : > { %2942 = vmatprep.subr.mxu0 %v3546_v56  ;;  %2974 = vmatpush3.msra.mxu1 %v1408_v1  ;;  %v1686_v1 = vld [vmem:[#allocation11 + $0xe8] sm:$0xff] }
 0x26d   : > { %2943 = vmatpush3.msra.mxu0 %v1289_v46  ;;  %2975 = vmatprep.subr.mxu1 %v3546_v56  ;;  %v1566_v46 = vld [vmem:[#allocation9 + $0x160] sm:$0xff] }
 0x26e   : > { %2944 = vmatprep.subr.mxu0 %v3546_v56  ;;  %2976 = vmatpush3.msra.mxu1 %v1407_v3  ;;  %v1685_v3 = vld [vmem:[#allocation11 + $0xe0] sm:$0xff] }
 0x26f   : > { %2945 = vmatpush3.msra.mxu0 %v1288_v47  ;;  %2977 = vmatprep.subr.mxu1 %v3546_v56  ;;  %v1565_v47 = vld [vmem:[#allocation9 + $0x158] sm:$0xff] }
 0x270   : > { %2946 = vmatprep.subr.mxu0 %v3546_v56  ;;  %2978 = vmatpush3.msra.mxu1 %v1406_v5  ;;  %v1684_v5 = vld [vmem:[#allocation11 + $0xd8] sm:$0xff] }
 0x271   : > { %2947 = vmatpush3.msra.mxu0 %v1287_v48  ;;  %2979 = vmatprep.subr.mxu1 %v3546_v56  ;;  %v1564_v48 = vld [vmem:[#allocation9 + $0x150] sm:$0xff] }
 0x272   : > { %2948 = vmatprep.subr.mxu0 %v3546_v56  ;;  %2980 = vmatpush3.msra.mxu1 %v1405_v7  ;;  %v1683_v7 = vld [vmem:[#allocation11 + $0xd0] sm:$0xff] }
 0x273   : > { %2949 = vmatpush3.msra.mxu0 %v1286_v49  ;;  %2981 = vmatprep.subr.mxu1 %v3546_v56  ;;  %v1563_v49 = vld [vmem:[#allocation9 + $0x148] sm:$0xff] }
 0x274   : > { %2950 = vmatprep.subr.mxu0 %v3546_v56  ;;  %2982 = vmatpush3.msra.mxu1 %v1404_v9  ;;  %v1682_v9 = vld [vmem:[#allocation11 + $0xc8] sm:$0xff] }
 0x275   : > { %2951 = vmatpush3.msra.mxu0 %v1285_v50  ;;  %2983 = vmatprep.subr.mxu1 %v3546_v56  ;;  %v1562_v50 = vld [vmem:[#allocation9 + $0x140] sm:$0xff] }
 0x276   : > { %2952 = vmatprep.subr.mxu0 %v3546_v56  ;;  %2984 = vmatpush3.msra.mxu1 %v1403_v11  ;;  %v1681_v11 = vld [vmem:[#allocation11 + $0xc0] sm:$0xff] }
 0x277   : > { %2953 = vmatpush3.msra.mxu0 %v1284_v51  ;;  %2985 = vmatprep.subr.mxu1 %v3546_v56  ;;  %v1561_v51 = vld [vmem:[#allocation9 + $0x138] sm:$0xff] }
 0x278   : > { %2954 = vmatprep.subr.mxu0 %v3546_v56  ;;  %2986 = vmatpush3.msra.mxu1 %v1402_v13  ;;  %v1680_v13 = vld [vmem:[#allocation11 + $0xb8] sm:$0xff] }
 0x279   : > { %2955 = vmatpush3.msra.mxu0 %v1283_v52  ;;  %2987 = vmatprep.subr.mxu1 %v3546_v56  ;;  %v1560_v52 = vld [vmem:[#allocation9 + $0x130] sm:$0xff] }
 0x27a   : > { %2956 = vmatprep.subr.mxu0 %v3546_v56  ;;  %2988 = vmatpush3.msra.mxu1 %v1401_v15  ;;  %v1679_v15 = vld [vmem:[#allocation11 + $0xb0] sm:$0xff] }
 0x27b   : > { %2957 = vmatpush3.msra.mxu0 %v1282_v53  ;;  %2989 = vmatprep.subr.mxu1 %v3546_v56  ;;  %v1559_v53 = vld [vmem:[#allocation9 + $0x128] sm:$0xff] }
 0x27c   : > { %2958 = vmatprep.subr.mxu0 %v3546_v56  ;;  %2990 = vmatpush3.msra.mxu1 %v1400_v17  ;;  %v1678_v17 = vld [vmem:[#allocation11 + $0xa8] sm:$0xff] }
 0x27d   : > { %2959 = vmatpush3.msra.mxu0 %v1281_v54  ;;  %2991 = vmatprep.subr.mxu1 %v3546_v56  ;;  %v1558_v54 = vld [vmem:[#allocation9 + $0x120] sm:$0xff] }
 0x27e   : > { %2960 = vmatprep.subr.mxu0 %v3546_v56  ;;  %2992 = vmatpush3.msra.mxu1 %v1399_v19  ;;  %v1677_v19 = vld [vmem:[#allocation11 + $0xa0] sm:$0xff] }
 0x27f   : > { %2961 = vmatpush3.msra.mxu0 %v1280_v55  ;;  %2993 = vmatprep.subr.mxu1 %v3546_v56  ;;  %v1557_v55 = vld [vmem:[#allocation9 + $0x118] sm:$0xff] }
 0x280   : > { %2962 = vmatprep.subr.mxu0 %v3546_v56  ;;  %2994 = vmatpush3.msra.mxu1 %v1398_v21  ;;  %v1676_v21 = vld [vmem:[#allocation11 + $0x98] sm:$0xff] }
 0x281   : > { %2963 = vmatpush3.msra.mxu0 %v1279_v57  ;;  %2995 = vmatprep.subr.mxu1 %v3546_v56  ;;  %v1556_v57 = vld [vmem:[#allocation9 + $0x110] sm:$0xff] }
 0x282   : > { %2965 = vmatmul.mubr.f32.vlgmr.msra.gmra.mxu0 %v1277_v58  ;;  %3002 = vmatprep.subr.mxu0 %v3546_v56  ;;  %v1555_v58 = vld [vmem:[#allocation9 + $0x108] sm:$0xff] }
 0x283   : > { %3034 = vmatprep.mubr.msk.f32.mxu0 %vm3547_vm0, %v3546_v56  ;;  %3003 = vmatpush3.msra.mxu0 %v1393_v60 }
 0x284   : > { %3004 = vmatprep.subr.mxu0 %v3546_v56  ;;  %2996 = vmatpush3.msra.mxu1 %v1397_v23  ;;  %v1675_v23 = vld [vmem:[#allocation11 + $0x90] sm:$0xff] }
 0x285   : > { %3005 = vmatpush3.msra.mxu0 %v1392_v62  ;;  %2997 = vmatprep.subr.mxu1 %v3546_v56  ;;  %v1670_v62 = vld [vmem:[#allocation11 + $0x78] sm:$0xff] }
 0x286   : > { %3006 = vmatprep.subr.mxu0 %v3546_v56  ;;  %2998 = vmatpush3.msra.mxu1 %v1396_v25  ;;  %v1674_v25 = vld [vmem:[#allocation11 + $0x88] sm:$0xff] }
 0x287   : > { %3007 = vmatpush3.msra.mxu0 %v1391_v0  ;;  %3037 = vmatprep.subr.mxu1 %v3546_v56  ;;  %v1669_v0 = vld [vmem:[#allocation11 + $0x70] sm:$0xff] }
 0x288   : > { %3008 = vmatprep.subr.mxu0 %v3546_v56 }
 0x289   : > { %3009 = vmatpush3.msra.mxu0 %v1390_v2  ;;  %v1668_v2 = vld [vmem:[#allocation11 + $0x68] sm:$0xff] }
 0x28a   : > { %3010 = vmatprep.subr.mxu0 %v3546_v56 }
 0x28b   : > { %3011 = vmatpush3.msra.mxu0 %v1389_v4  ;;  %v1667_v4 = vld [vmem:[#allocation11 + $0x60] sm:$0xff] }
 0x28c   : > { %3012 = vmatprep.subr.mxu0 %v3546_v56 }
 0x28d   : > { %3013 = vmatpush3.msra.mxu0 %v1388_v6  ;;  %v1666_v6 = vld [vmem:[#allocation11 + $0x58] sm:$0xff] }
 0x28e   : > { %3014 = vmatprep.subr.mxu0 %v3546_v56 }
 0x28f   : > { %3015 = vmatpush3.msra.mxu0 %v1387_v8  ;;  %v1665_v8 = vld [vmem:[#allocation11 + $0x50] sm:$0xff] }
 0x290   : > { %3016 = vmatprep.subr.mxu0 %v3546_v56 }
 0x291   : > { %3017 = vmatpush3.msra.mxu0 %v1386_v10  ;;  %v1664_v10 = vld [vmem:[#allocation11 + $0x48] sm:$0xff] }
 0x292   : > { %3018 = vmatprep.subr.mxu0 %v3546_v56 }
 0x293   : > { %3019 = vmatpush3.msra.mxu0 %v1385_v12  ;;  %v1663_v12 = vld [vmem:[#allocation11 + $0x40] sm:$0xff] }
 0x294   : > { %3020 = vmatprep.subr.mxu0 %v3546_v56 }
 0x295   : > { %3021 = vmatpush3.msra.mxu0 %v1384_v14  ;;  %v1662_v14 = vld [vmem:[#allocation11 + $0x38] sm:$0xff] }
 0x296   : > { %3022 = vmatprep.subr.mxu0 %v3546_v56 }
 0x297   : > { %3023 = vmatpush3.msra.mxu0 %v1383_v16  ;;  %v1661_v16 = vld [vmem:[#allocation11 + $0x30] sm:$0xff] }
 0x298   : > { %3024 = vmatprep.subr.mxu0 %v3546_v56 }
 0x299   : > { %3025 = vmatpush3.msra.mxu0 %v1382_v18  ;;  %v1660_v18 = vld [vmem:[#allocation11 + $0x28] sm:$0xff] }
 0x29a   : > { %3026 = vmatprep.subr.mxu0 %v3546_v56 }
 0x29b   : > { %3027 = vmatpush3.msra.mxu0 %v1381_v20  ;;  %v1659_v20 = vld [vmem:[#allocation11 + $0x20] sm:$0xff] }
 0x29c   : > { %3028 = vmatprep.subr.mxu0 %v3546_v56 }
 0x29d   : > { %3029 = vmatpush3.msra.mxu0 %v1380_v22  ;;  %v1658_v22 = vld [vmem:[#allocation11 + $0x18] sm:$0xff] }
 0x29e   : > { %3030 = vmatprep.subr.mxu0 %v3546_v56 }
 0x29f   : > { %3031 = vmatpush3.msra.mxu0 %v1379_v24  ;;  %v1657_v24 = vld [vmem:[#allocation11 + $0x10] sm:$0xff] }
 0x2a0   : > { %3032 = vmatprep.subr.mxu0 %v3546_v56 }
 0x2a1   : > { %3033 = vmatpush3.msra.mxu0 %v1378_v26  ;;  %v1656_v26 = vld [vmem:[#allocation11 + $0x8] sm:$0xff] }
 0x2a2   : > { %3072 = vmatprep.subr.mxu0 %v3546_v56 }
 0x322   : > { %v1203_v27 = vpop.f32.mrf.mxu0 }
 0x323   : > { %v1273_v28 = vpop.f32.mrf.mxu1 }
 0x324   : > { %v2896_v29 = vpop.f32.mrf.mxu0  ;;  %v1274_v31 = vadd.f32 %v1273_v28, %v1203_v27  ;;  %v1673_v27 = vld [vmem:[#allocation11 + $0x80] sm:$0xff] }
 0x325   : > { %v2931_v30 = vpop.f32.mrf.mxu1  ;;  %v1655_v28 = vld [vmem:[#allocation11] sm:$0xff] }
 0x342   : > { %v1361_v33 = vpop.f32.mrf.mxu0 }
 0x343   : > { %v1365_v35 = vadd.f32 %v1361_v33, %v1274_v31 }
 0x344   : > { %v2966_v36 = vpop.f32.mrf.mxu0 }
 0x345   : > { %v1372_v38 = vadd.f32 %v2337_v32, %v1365_v35  ;;  %v2338_v35 = vld [vmem:[%s4079_s8] ss:$0 sm:$0xff] }
 0x347   : > { %v1373_v39 = vmax.f32 %v1372_v38, 0.0 }
 0x349   : > { %v1374_v40 = vmul.f32 %v1373_v39, %v3859_v34 }
 0x34b   : > { %1375 = vst [vmem:[#allocation3 + $0x1] sm:$0x7f] %v1374_v40 }
 0x352   : > { %v1394_v42 = vld [vmem:[#allocation3 + $0x1] sm:$0x7f] }
 0x353   : > { %v1377_v43 = vld [vmem:[#allocation3] sm:$0x7f]  ;;  %3000 = vmatmul.mubr.f32.vlgmr.msra.gmra.mxu1 %v1394_v42 }
 0x354   : > { %3035 = vmatmul.mubr.f32.vlgmr.msra.gmra.mxu0 %v1377_v43  ;;  %3038 = vmatpush3.msra.mxu1 %v1569_v41  ;;  %v1552_v60 = vld [vmem:[#allocation3 + $0x2] sm:$0x7f] }
 0x355   : > { %3069 = vmatprep.mubr.msk.f32.mxu1 %vm3547_vm0, %v3546_v56  ;;  %3039 = vmatprep.subr.mxu1 %v3546_v56 }
 0x356   : > { %3104 = vmatprep.mubr.msk.f32.mxu0 %vm3547_vm0, %v3546_v56  ;;  %3040 = vmatpush3.msra.mxu1 %v1568_v44 }
 0x357   : > { %3041 = vmatprep.subr.mxu1 %v3546_v56  ;;  %3073 = vmatpush3.msra.mxu0 %v1688_v61  ;;  %v1832_v61 = vld [vmem:[#allocation11 + $0x108] sm:$0xff] }
 0x358   : > { %3042 = vmatpush3.msra.mxu1 %v1567_v45  ;;  %3074 = vmatprep.subr.mxu0 %v3546_v56  ;;  %v1846_v45 = vld [vmem:[#allocation11 + $0x178] sm:$0xff] }
 0x359   : > { %3043 = vmatprep.subr.mxu1 %v3546_v56  ;;  %3075 = vmatpush3.msra.mxu0 %v1687_v63 }
 0x35a   : > { %3044 = vmatpush3.msra.mxu1 %v1566_v46  ;;  %3076 = vmatprep.subr.mxu0 %v3546_v56 }
 0x35b   : > { %3045 = vmatprep.subr.mxu1 %v3546_v56  ;;  %3077 = vmatpush3.msra.mxu0 %v1686_v1  ;;  %v1945_v1 = vld [vmem:[#allocation12 + $0x78] sm:$0xff] }
 0x35c   : > { %3046 = vmatpush3.msra.mxu1 %v1565_v47  ;;  %3078 = vmatprep.subr.mxu0 %v3546_v56 }
 0x35d   : > { %3047 = vmatprep.subr.mxu1 %v3546_v56  ;;  %3079 = vmatpush3.msra.mxu0 %v1685_v3  ;;  %v1944_v3 = vld [vmem:[#allocation12 + $0x70] sm:$0xff] }
 0x35e   : > { %3048 = vmatpush3.msra.mxu1 %v1564_v48  ;;  %3080 = vmatprep.subr.mxu0 %v3546_v56  ;;  %v1845_v48 = vld [vmem:[#allocation11 + $0x170] sm:$0xff] }
 0x35f   : > { %3049 = vmatprep.subr.mxu1 %v3546_v56  ;;  %3081 = vmatpush3.msra.mxu0 %v1684_v5  ;;  %v1943_v5 = vld [vmem:[#allocation12 + $0x68] sm:$0xff] }
 0x360   : > { %3050 = vmatpush3.msra.mxu1 %v1563_v49  ;;  %3082 = vmatprep.subr.mxu0 %v3546_v56  ;;  %v1844_v49 = vld [vmem:[#allocation11 + $0x168] sm:$0xff] }
 0x361   : > { %3051 = vmatprep.subr.mxu1 %v3546_v56  ;;  %3083 = vmatpush3.msra.mxu0 %v1683_v7  ;;  %v1942_v7 = vld [vmem:[#allocation12 + $0x60] sm:$0xff] }
 0x362   : > { %3052 = vmatpush3.msra.mxu1 %v1562_v50  ;;  %3084 = vmatprep.subr.mxu0 %v3546_v56  ;;  %v1842_v50 = vld [vmem:[#allocation11 + $0x158] sm:$0xff] }
 0x363   : > { %3053 = vmatprep.subr.mxu1 %v3546_v56  ;;  %3085 = vmatpush3.msra.mxu0 %v1682_v9  ;;  %v1941_v9 = vld [vmem:[#allocation12 + $0x58] sm:$0xff] }
 0x364   : > { %3054 = vmatpush3.msra.mxu1 %v1561_v51  ;;  %3086 = vmatprep.subr.mxu0 %v3546_v56  ;;  %v1841_v51 = vld [vmem:[#allocation11 + $0x150] sm:$0xff] }
 0x365   : > { %3055 = vmatprep.subr.mxu1 %v3546_v56  ;;  %3087 = vmatpush3.msra.mxu0 %v1681_v11  ;;  %v1940_v11 = vld [vmem:[#allocation12 + $0x50] sm:$0xff] }
 0x366   : > { %3056 = vmatpush3.msra.mxu1 %v1560_v52  ;;  %3088 = vmatprep.subr.mxu0 %v3546_v56  ;;  %v1840_v52 = vld [vmem:[#allocation11 + $0x148] sm:$0xff] }
 0x367   : > { %3057 = vmatprep.subr.mxu1 %v3546_v56  ;;  %3089 = vmatpush3.msra.mxu0 %v1680_v13  ;;  %v1939_v13 = vld [vmem:[#allocation12 + $0x48] sm:$0xff] }
 0x368   : > { %3058 = vmatpush3.msra.mxu1 %v1559_v53  ;;  %3090 = vmatprep.subr.mxu0 %v3546_v56  ;;  %v1839_v53 = vld [vmem:[#allocation11 + $0x140] sm:$0xff] }
 0x369   : > { %3059 = vmatprep.subr.mxu1 %v3546_v56  ;;  %3091 = vmatpush3.msra.mxu0 %v1679_v15  ;;  %v1938_v15 = vld [vmem:[#allocation12 + $0x40] sm:$0xff] }
 0x36a   : > { %3060 = vmatpush3.msra.mxu1 %v1558_v54  ;;  %3092 = vmatprep.subr.mxu0 %v3546_v56  ;;  %v1838_v54 = vld [vmem:[#allocation11 + $0x138] sm:$0xff] }
 0x36b   : > { %3061 = vmatprep.subr.mxu1 %v3546_v56  ;;  %3093 = vmatpush3.msra.mxu0 %v1678_v17  ;;  %v1937_v17 = vld [vmem:[#allocation12 + $0x38] sm:$0xff] }
 0x36c   : > { %3062 = vmatpush3.msra.mxu1 %v1557_v55  ;;  %3094 = vmatprep.subr.mxu0 %v3546_v56  ;;  %v1837_v55 = vld [vmem:[#allocation11 + $0x130] sm:$0xff] }
 0x36d   : > { %3063 = vmatprep.subr.mxu1 %v3546_v56  ;;  %3095 = vmatpush3.msra.mxu0 %v1677_v19  ;;  %v1936_v19 = vld [vmem:[#allocation12 + $0x30] sm:$0xff] }
 0x36e   : > { %3064 = vmatpush3.msra.mxu1 %v1556_v57  ;;  %3096 = vmatprep.subr.mxu0 %v3546_v56  ;;  %v1836_v57 = vld [vmem:[#allocation11 + $0x128] sm:$0xff] }
 0x36f   : > { %3065 = vmatprep.subr.mxu1 %v3546_v56  ;;  %3097 = vmatpush3.msra.mxu0 %v1676_v21  ;;  %v1935_v21 = vld [vmem:[#allocation12 + $0x28] sm:$0xff] }
 0x370   : > { %3066 = vmatpush3.msra.mxu1 %v1555_v58  ;;  %3098 = vmatprep.subr.mxu0 %v3546_v56  ;;  %v1835_v58 = vld [vmem:[#allocation11 + $0x120] sm:$0xff] }
 0x371   : > { %3067 = vmatprep.subr.mxu1 %v3546_v56  ;;  %3099 = vmatpush3.msra.mxu0 %v1675_v23  ;;  %v1934_v23 = vld [vmem:[#allocation12 + $0x20] sm:$0xff] }
 0x372   : > { %3068 = vmatpush3.msra.mxu1 %v1554_v59  ;;  %3100 = vmatprep.subr.mxu0 %v3546_v56  ;;  %v1834_v59 = vld [vmem:[#allocation11 + $0x118] sm:$0xff] }
 0x373   : > { %3070 = vmatmul.mubr.f32.vlgmr.msra.gmra.mxu1 %v1552_v60  ;;  %3107 = vmatprep.subr.mxu1 %v3546_v56  ;;  %v1833_v60 = vld [vmem:[#allocation11 + $0x110] sm:$0xff] }
 0x374   : > { %3139 = vmatprep.mubr.msk.f32.mxu1 %vm3547_vm0, %v3546_v56  ;;  %3108 = vmatpush3.msra.mxu1 %v1670_v62  ;;  %v1831_v62 = vld [vmem:[#allocation11 + $0x100] sm:$0xff] }
 0x375   : > { %3109 = vmatprep.subr.mxu1 %v3546_v56  ;;  %3101 = vmatpush3.msra.mxu0 %v1674_v25  ;;  %v1933_v25 = vld [vmem:[#allocation12 + $0x18] sm:$0xff] }
 0x376   : > { %3110 = vmatpush3.msra.mxu1 %v1669_v0  ;;  %3102 = vmatprep.subr.mxu0 %v3546_v56  ;;  %v1963_v0 = vld [vmem:[#allocation12 + $0xf8] sm:$0xff] }
 0x377   : > { %3111 = vmatprep.subr.mxu1 %v3546_v56  ;;  %3103 = vmatpush3.msra.mxu0 %v1673_v27  ;;  %v1932_v27 = vld [vmem:[#allocation12 + $0x10] sm:$0xff] }
 0x378   : > { %3112 = vmatpush3.msra.mxu1 %v1668_v2  ;;  %3142 = vmatprep.subr.mxu0 %v3546_v56  ;;  %v1962_v2 = vld [vmem:[#allocation12 + $0xf0] sm:$0xff] }
 0x379   : > { %3113 = vmatprep.subr.mxu1 %v3546_v56 }
 0x37a   : > { %3114 = vmatpush3.msra.mxu1 %v1667_v4  ;;  %v1961_v4 = vld [vmem:[#allocation12 + $0xe8] sm:$0xff] }
 0x37b   : > { %3115 = vmatprep.subr.mxu1 %v3546_v56 }
 0x37c   : > { %3116 = vmatpush3.msra.mxu1 %v1666_v6  ;;  %v1960_v6 = vld [vmem:[#allocation12 + $0xe0] sm:$0xff] }
 0x37d   : > { %3117 = vmatprep.subr.mxu1 %v3546_v56 }
 0x37e   : > { %3118 = vmatpush3.msra.mxu1 %v1665_v8  ;;  %v1959_v8 = vld [vmem:[#allocation12 + $0xd8] sm:$0xff] }
 0x37f   : > { %3119 = vmatprep.subr.mxu1 %v3546_v56 }
 0x380   : > { %3120 = vmatpush3.msra.mxu1 %v1664_v10  ;;  %v1958_v10 = vld [vmem:[#allocation12 + $0xd0] sm:$0xff] }
 0x381   : > { %3121 = vmatprep.subr.mxu1 %v3546_v56 }
 0x382   : > { %3122 = vmatpush3.msra.mxu1 %v1663_v12  ;;  %v1957_v12 = vld [vmem:[#allocation12 + $0xc8] sm:$0xff] }
 0x383   : > { %3123 = vmatprep.subr.mxu1 %v3546_v56 }
 0x384   : > { %3124 = vmatpush3.msra.mxu1 %v1662_v14  ;;  %v1956_v14 = vld [vmem:[#allocation12 + $0xc0] sm:$0xff] }
 0x385   : > { %3125 = vmatprep.subr.mxu1 %v3546_v56 }
 0x386   : > { %3126 = vmatpush3.msra.mxu1 %v1661_v16  ;;  %v1955_v16 = vld [vmem:[#allocation12 + $0xb8] sm:$0xff] }
 0x387   : > { %3127 = vmatprep.subr.mxu1 %v3546_v56 }
 0x388   : > { %3128 = vmatpush3.msra.mxu1 %v1660_v18  ;;  %v1954_v18 = vld [vmem:[#allocation12 + $0xb0] sm:$0xff] }
 0x389   : > { %3129 = vmatprep.subr.mxu1 %v3546_v56 }
 0x38a   : > { %3130 = vmatpush3.msra.mxu1 %v1659_v20  ;;  %v1953_v20 = vld [vmem:[#allocation12 + $0xa8] sm:$0xff] }
 0x38b   : > { %3131 = vmatprep.subr.mxu1 %v3546_v56 }
 0x38c   : > { %3132 = vmatpush3.msra.mxu1 %v1658_v22  ;;  %v1952_v22 = vld [vmem:[#allocation12 + $0xa0] sm:$0xff] }
 0x38d   : > { %3133 = vmatprep.subr.mxu1 %v3546_v56 }
 0x38e   : > { %3134 = vmatpush3.msra.mxu1 %v1657_v24  ;;  %v1951_v24 = vld [vmem:[#allocation12 + $0x98] sm:$0xff] }
 0x38f   : > { %3135 = vmatprep.subr.mxu1 %v3546_v56 }
 0x390   : > { %3136 = vmatpush3.msra.mxu1 %v1656_v26  ;;  %v1950_v26 = vld [vmem:[#allocation12 + $0x90] sm:$0xff] }
 0x391   : > { %3137 = vmatprep.subr.mxu1 %v3546_v56 }
 0x392   : > { %3138 = vmatpush3.msra.mxu1 %v1655_v28  ;;  %v1949_v28 = vld [vmem:[#allocation12 + $0x88] sm:$0xff] }
 0x393   : > { %3177 = vmatprep.subr.mxu1 %v3546_v56 }
 0x413   : > { %v1478_v29 = vpop.f32.mrf.mxu1 }
 0x414   : > { %v1548_v30 = vpop.f32.mrf.mxu0 }
 0x415   : > { %v3001_v31 = vpop.f32.mrf.mxu1  ;;  %v1549_v33 = vadd.f32 %v1548_v30, %v1478_v29  ;;  %v1931_v29 = vld [vmem:[#allocation12 + $0x8] sm:$0xff]  ;;  %v1948_v30 = vld [vmem:[#allocation12 + $0x80] sm:$0xff] }
 0x416   : > { %v3036_v32 = vpop.f32.mrf.mxu0  ;;  %v1930_v31 = vld [vmem:[#allocation12] sm:$0xff] }
 0x433   : > { %v1636_v36 = vpop.f32.mrf.mxu1 }
 0x434   : > { %v1640_v38 = vadd.f32 %v1636_v36, %v1549_v33 }
 0x435   : > { %v3071_v39 = vpop.f32.mrf.mxu1 }
 0x436   : > { %v1647_v40 = vadd.f32 %v2338_v35, %v1640_v38  ;;  %v2339_v39 = vld [vmem:[%s4081_s10] ss:$0 sm:$0xff] }
 0x438   : > { %v1648_v41 = vmax.f32 %v1647_v40, 0.0 }
 0x43a   : > { %v1649_v42 = vmul.f32 %v1648_v41, %v3859_v34 }
 0x43c   : > { %v3982_v43 = vadd.f32 %v1649_v42, %v3862_v37  ;;  %v1843_v37 = vld [vmem:[#allocation11 + $0x160] sm:$0xff] }
 0x43e   : > { %v1651_v44 = vmax.f32 %v3982_v43, 0.0 }
 0x440   : > { %1652 = vst [vmem:[#allocation3 + $0x1] sm:$0x7f] %v1651_v44 }
 0x447   : > { %v1671_v46 = vld [vmem:[#allocation3 + $0x1] sm:$0x7f] }
 0x448   : > { %v1654_v47 = vld [vmem:[#allocation3] sm:$0x7f]  ;;  %3105 = vmatmul.mubr.f32.vlgmr.msra.gmra.mxu0 %v1671_v46 }
 0x449   : > { %3140 = vmatmul.mubr.f32.vlgmr.msra.gmra.mxu1 %v1654_v47  ;;  %3143 = vmatpush3.msra.mxu0 %v1846_v45  ;;  %v1829_v63 = vld [vmem:[#allocation3 + $0x2] sm:$0x7f] }
 0x44a   : > { %3174 = vmatprep.mubr.msk.f32.mxu0 %vm3547_vm0, %v3546_v56  ;;  %3144 = vmatprep.subr.mxu0 %v3546_v56  ;;  %v2121_v47 = vld [vmem:[#allocation12 + $0x178] sm:$0xff] }
 0x44b   : > { %3209 = vmatprep.mubr.msk.f32.mxu1 %vm3547_vm0, %v3546_v56  ;;  %3145 = vmatpush3.msra.mxu0 %v1845_v48 }
 0x44c   : > { %3146 = vmatprep.subr.mxu0 %v3546_v56  ;;  %3178 = vmatpush3.msra.mxu1 %v1963_v0  ;;  %v2106_v0 = vld [vmem:[#allocation12 + $0x100] sm:$0xff] }
 0x44d   : > { %3147 = vmatpush3.msra.mxu0 %v1844_v49  ;;  %3179 = vmatprep.subr.mxu1 %v3546_v56 }
 0x44e   : > { %3148 = vmatprep.subr.mxu0 %v3546_v56  ;;  %3180 = vmatpush3.msra.mxu1 %v1962_v2 }
 0x44f   : > { %3149 = vmatpush3.msra.mxu0 %v1843_v37  ;;  %3181 = vmatprep.subr.mxu1 %v3546_v56  ;;  %v2120_v37 = vld [vmem:[#allocation12 + $0x170] sm:$0xff] }
 0x450   : > { %3150 = vmatprep.subr.mxu0 %v3546_v56  ;;  %3182 = vmatpush3.msra.mxu1 %v1961_v4 }
 0x451   : > { %3151 = vmatpush3.msra.mxu0 %v1842_v50  ;;  %3183 = vmatprep.subr.mxu1 %v3546_v56  ;;  %v2119_v50 = vld [vmem:[#allocation12 + $0x168] sm:$0xff] }
 0x452   : > { %3152 = vmatprep.subr.mxu0 %v3546_v56  ;;  %3184 = vmatpush3.msra.mxu1 %v1960_v6 }
 0x453   : > { %3153 = vmatpush3.msra.mxu0 %v1841_v51  ;;  %3185 = vmatprep.subr.mxu1 %v3546_v56  ;;  %v2118_v51 = vld [vmem:[#allocation12 + $0x160] sm:$0xff] }
 0x454   : > { %3154 = vmatprep.subr.mxu0 %v3546_v56  ;;  %3186 = vmatpush3.msra.mxu1 %v1959_v8 }
 0x455   : > { %3155 = vmatpush3.msra.mxu0 %v1840_v52  ;;  %3187 = vmatprep.subr.mxu1 %v3546_v56  ;;  %v2117_v52 = vld [vmem:[#allocation12 + $0x158] sm:$0xff] }
 0x456   : > { %3156 = vmatprep.subr.mxu0 %v3546_v56  ;;  %3188 = vmatpush3.msra.mxu1 %v1958_v10 }
 0x457   : > { %3157 = vmatpush3.msra.mxu0 %v1839_v53  ;;  %3189 = vmatprep.subr.mxu1 %v3546_v56  ;;  %v2116_v53 = vld [vmem:[#allocation12 + $0x150] sm:$0xff] }
 0x458   : > { %3158 = vmatprep.subr.mxu0 %v3546_v56  ;;  %3190 = vmatpush3.msra.mxu1 %v1957_v12 }
 0x459   : > { %3159 = vmatpush3.msra.mxu0 %v1838_v54  ;;  %3191 = vmatprep.subr.mxu1 %v3546_v56  ;;  %v2115_v54 = vld [vmem:[#allocation12 + $0x148] sm:$0xff] }
 0x45a   : > { %3160 = vmatprep.subr.mxu0 %v3546_v56  ;;  %3192 = vmatpush3.msra.mxu1 %v1956_v14 }
 0x45b   : > { %3161 = vmatpush3.msra.mxu0 %v1837_v55  ;;  %3193 = vmatprep.subr.mxu1 %v3546_v56  ;;  %v2114_v55 = vld [vmem:[#allocation12 + $0x140] sm:$0xff] }
 0x45c   : > { %3162 = vmatprep.subr.mxu0 %v3546_v56  ;;  %3194 = vmatpush3.msra.mxu1 %v1955_v16 }
 0x45d   : > { %3163 = vmatpush3.msra.mxu0 %v1836_v57  ;;  %3195 = vmatprep.subr.mxu1 %v3546_v56  ;;  %v2113_v57 = vld [vmem:[#allocation12 + $0x138] sm:$0xff] }
 0x45e   : > { %3164 = vmatprep.subr.mxu0 %v3546_v56  ;;  %3196 = vmatpush3.msra.mxu1 %v1954_v18 }
 0x45f   : > { %3165 = vmatpush3.msra.mxu0 %v1835_v58  ;;  %3197 = vmatprep.subr.mxu1 %v3546_v56  ;;  %v2112_v58 = vld [vmem:[#allocation12 + $0x130] sm:$0xff] }
 0x460   : > { %3166 = vmatprep.subr.mxu0 %v3546_v56  ;;  %3198 = vmatpush3.msra.mxu1 %v1953_v20 }
 0x461   : > { %3167 = vmatpush3.msra.mxu0 %v1834_v59  ;;  %3199 = vmatprep.subr.mxu1 %v3546_v56  ;;  %v2111_v59 = vld [vmem:[#allocation12 + $0x128] sm:$0xff] }
 0x462   : > { %3168 = vmatprep.subr.mxu0 %v3546_v56  ;;  %3200 = vmatpush3.msra.mxu1 %v1952_v22 }
 0x463   : > { %3169 = vmatpush3.msra.mxu0 %v1833_v60  ;;  %3201 = vmatprep.subr.mxu1 %v3546_v56  ;;  %v2110_v60 = vld [vmem:[#allocation12 + $0x120] sm:$0xff] }
 0x464   : > { %3170 = vmatprep.subr.mxu0 %v3546_v56  ;;  %3202 = vmatpush3.msra.mxu1 %v1951_v24 }
 0x465   : > { %3171 = vmatpush3.msra.mxu0 %v1832_v61  ;;  %3203 = vmatprep.subr.mxu1 %v3546_v56  ;;  %v2109_v61 = vld [vmem:[#allocation12 + $0x118] sm:$0xff] }
 0x466   : > { %3172 = vmatprep.subr.mxu0 %v3546_v56  ;;  %3204 = vmatpush3.msra.mxu1 %v1950_v26 }
 0x467   : > { %3173 = vmatpush3.msra.mxu0 %v1831_v62  ;;  %3205 = vmatprep.subr.mxu1 %v3546_v56  ;;  %v2108_v62 = vld [vmem:[#allocation12 + $0x110] sm:$0xff] }
 0x468   : > { %3175 = vmatmul.mubr.f32.vlgmr.msra.gmra.mxu0 %v1829_v63  ;;  %3212 = vmatprep.subr.mxu0 %v3546_v56  ;;  %v2107_v63 = vld [vmem:[#allocation12 + $0x108] sm:$0xff] }
 0x469   : > { %3244 = vmatprep.mubr.msk.f32.mxu0 %vm3547_vm0, %v3546_v56  ;;  %3213 = vmatpush3.msra.mxu0 %v1945_v1 }
 0x46a   : > { %3214 = vmatprep.subr.mxu0 %v3546_v56  ;;  %3206 = vmatpush3.msra.mxu1 %v1949_v28 }
 0x46b   : > { %3215 = vmatpush3.msra.mxu0 %v1944_v3  ;;  %3207 = vmatprep.subr.mxu1 %v3546_v56 }
 0x46c   : > { %3216 = vmatprep.subr.mxu0 %v3546_v56  ;;  %3208 = vmatpush3.msra.mxu1 %v1948_v30 }
 0x46d   : > { %3217 = vmatpush3.msra.mxu0 %v1943_v5  ;;  %3247 = vmatprep.subr.mxu1 %v3546_v56 }
 0x46e   : > { %3218 = vmatprep.subr.mxu0 %v3546_v56 }
 0x46f   : > { %3219 = vmatpush3.msra.mxu0 %v1942_v7  ;;  %v2340_v7 = vld [vmem:[%s4083_s12] ss:$0 sm:$0xff] }
 0x470   : > { %3220 = vmatprep.subr.mxu0 %v3546_v56 }
 0x471   : > { %3221 = vmatpush3.msra.mxu0 %v1941_v9 }
 0x472   : > { %3222 = vmatprep.subr.mxu0 %v3546_v56 }
 0x473   : > { %3223 = vmatpush3.msra.mxu0 %v1940_v11 }
 0x474   : > { %3224 = vmatprep.subr.mxu0 %v3546_v56 }
 0x475   : > { %3225 = vmatpush3.msra.mxu0 %v1939_v13 }
 0x476   : > { %3226 = vmatprep.subr.mxu0 %v3546_v56 }
 0x477   : > { %3227 = vmatpush3.msra.mxu0 %v1938_v15 }
 0x478   : > { %3228 = vmatprep.subr.mxu0 %v3546_v56 }
 0x479   : > { %3229 = vmatpush3.msra.mxu0 %v1937_v17 }
 0x47a   : > { %3230 = vmatprep.subr.mxu0 %v3546_v56 }
 0x47b   : > { %3231 = vmatpush3.msra.mxu0 %v1936_v19 }
 0x47c   : > { %3232 = vmatprep.subr.mxu0 %v3546_v56 }
 0x47d   : > { %3233 = vmatpush3.msra.mxu0 %v1935_v21 }
 0x47e   : > { %3234 = vmatprep.subr.mxu0 %v3546_v56 }
 0x47f   : > { %3235 = vmatpush3.msra.mxu0 %v1934_v23 }
 0x480   : > { %3236 = vmatprep.subr.mxu0 %v3546_v56 }
 0x481   : > { %3237 = vmatpush3.msra.mxu0 %v1933_v25 }
 0x482   : > { %3238 = vmatprep.subr.mxu0 %v3546_v56 }
 0x483   : > { %3239 = vmatpush3.msra.mxu0 %v1932_v27 }
 0x484   : > { %3240 = vmatprep.subr.mxu0 %v3546_v56 }
 0x485   : > { %3241 = vmatpush3.msra.mxu0 %v1931_v29 }
 0x486   : > { %3242 = vmatprep.subr.mxu0 %v3546_v56 }
 0x487   : > { %3243 = vmatpush3.msra.mxu0 %v1930_v31 }
 0x508   : > { %v1755_v32 = vpop.f32.mrf.mxu0 }
 0x509   : > { %v1825_v33 = vpop.f32.mrf.mxu1 }
 0x50a   : > { %v3106_v35 = vpop.f32.mrf.mxu0  ;;  %v1826_v38 = vadd.f32 %v1825_v33, %v1755_v32 }
 0x50b   : > { %v3141_v36 = vpop.f32.mrf.mxu1 }
 0x528   : > { %v1913_v40 = vpop.f32.mrf.mxu0 }
 0x529   : > { %v1917_v41 = vadd.f32 %v1913_v40, %v1826_v38 }
 0x52a   : > { %v3176_v42 = vpop.f32.mrf.mxu0 }
 0x52b   : > { %v1924_v44 = vadd.f32 %v2339_v39, %v1917_v41 }
 0x52d   : > { %v1925_v45 = vmax.f32 %v1924_v44, 0.0 }
 0x52f   : > { %v1926_v46 = vmul.f32 %v1925_v45, %v3859_v34 }
 0x531   : > { %1927 = vst [vmem:[#allocation3 + $0x1] sm:$0x7f] %v1926_v46 }
 0x538   : > { %v1946_v48 = vld [vmem:[#allocation3 + $0x1] sm:$0x7f] }
 0x539   : > { %v1929_v49 = vld [vmem:[#allocation3] sm:$0x7f]  ;;  %3210 = vmatmul.mubr.f32.vlgmr.msra.gmra.mxu1 %v1946_v48 }
 0x53a   : > { %3245 = vmatmul.mubr.f32.vlgmr.msra.gmra.mxu0 %v1929_v49  ;;  %3248 = vmatpush3.msra.mxu1 %v2121_v47  ;;  %v2104_v1 = vld [vmem:[#allocation3 + $0x2] sm:$0x7f] }
 0x53b   : > { %3279 = vmatprep.mubr.msk.f32.mxu1 %vm3547_vm0, %v3546_v56  ;;  %3249 = vmatprep.subr.mxu1 %v3546_v56 }
 0x53c   : > { %3250 = vmatpush3.msra.mxu1 %v2120_v37 }
 0x53d   : > { %3251 = vmatprep.subr.mxu1 %v3546_v56 }
 0x53e   : > { %3252 = vmatpush3.msra.mxu1 %v2119_v50 }
 0x53f   : > { %3253 = vmatprep.subr.mxu1 %v3546_v56 }
 0x540   : > { %3254 = vmatpush3.msra.mxu1 %v2118_v51 }
 0x541   : > { %3255 = vmatprep.subr.mxu1 %v3546_v56 }
 0x542   : > { %3256 = vmatpush3.msra.mxu1 %v2117_v52 }
 0x543   : > { %3257 = vmatprep.subr.mxu1 %v3546_v56 }
 0x544   : > { %3258 = vmatpush3.msra.mxu1 %v2116_v53 }
 0x545   : > { %3259 = vmatprep.subr.mxu1 %v3546_v56 }
 0x546   : > { %3260 = vmatpush3.msra.mxu1 %v2115_v54 }
 0x547   : > { %3261 = vmatprep.subr.mxu1 %v3546_v56 }
 0x548   : > { %3262 = vmatpush3.msra.mxu1 %v2114_v55 }
 0x549   : > { %3263 = vmatprep.subr.mxu1 %v3546_v56 }
 0x54a   : > { %3264 = vmatpush3.msra.mxu1 %v2113_v57 }
 0x54b   : > { %3265 = vmatprep.subr.mxu1 %v3546_v56 }
 0x54c   : > { %3266 = vmatpush3.msra.mxu1 %v2112_v58 }
 0x54d   : > { %3267 = vmatprep.subr.mxu1 %v3546_v56 }
 0x54e   : > { %3268 = vmatpush3.msra.mxu1 %v2111_v59 }
 0x54f   : > { %3269 = vmatprep.subr.mxu1 %v3546_v56 }
 0x550   : > { %3270 = vmatpush3.msra.mxu1 %v2110_v60 }
 0x551   : > { %3271 = vmatprep.subr.mxu1 %v3546_v56 }
 0x552   : > { %3272 = vmatpush3.msra.mxu1 %v2109_v61 }
 0x553   : > { %3273 = vmatprep.subr.mxu1 %v3546_v56 }
 0x554   : > { %3274 = vmatpush3.msra.mxu1 %v2108_v62 }
 0x555   : > { %3275 = vmatprep.subr.mxu1 %v3546_v56 }
 0x556   : > { %3276 = vmatpush3.msra.mxu1 %v2107_v63 }
 0x557   : > { %3277 = vmatprep.subr.mxu1 %v3546_v56 }
 0x558   : > { %3278 = vmatpush3.msra.mxu1 %v2106_v0 }
 0x559   : > { %3280 = vmatmul.mubr.f32.vlgmr.msra.gmra.mxu1 %v2104_v1 }
 0x5f9   : > { %v2030_v2 = vpop.f32.mrf.mxu1 }
 0x5fa   : > { %v2100_v3 = vpop.f32.mrf.mxu0 }
 0x5fb   : > { %v3211_v4 = vpop.f32.mrf.mxu1  ;;  %v2101_v6 = vadd.f32 %v2100_v3, %v2030_v2 }
 0x5fc   : > { %v3246_v5 = vpop.f32.mrf.mxu0 }
 0x619   : > { %v2188_v8 = vpop.f32.mrf.mxu1 }
 0x61a   : > { %v2192_v9 = vadd.f32 %v2188_v8, %v2101_v6 }
 0x61b   : > { %v3281_v10 = vpop.f32.mrf.mxu1 }
 0x61c   : > { %v2199_v11 = vadd.f32 %v2340_v7, %v2192_v9 }
 0x61e   : > { %v2200_v12 = vmax.f32 %v2199_v11, 0.0 }
 0x620   : > { %v2201_v56 = vmul.f32 %v2200_v12, %v3859_v34 }
 0x622   : > { %v2202_v13 = vadd.f32 %v2201_v56, %v3982_v43 }
 0x624   : > { %2203 = vst [vmem:[%s526_s23] sm:$0x7f] %v2202_v13 }
 0x625 PF: > { %s27_s25 = sadd.s32 1, %s3536_s25  }
 0x626   : > { %p24_p3 = scmp.ge.s32.totalorder %s27_s25, 4  }
 0x628   :  { %26 = sbr.rel (!%p24_p3) target bundleno = 4 (0x4), region = 141 }
 0x62d   :  { %2223 = vsyncpa [#allocation5], 1 }
 0x62e   :  { %2225 = vsyncpa [#allocation5 + $0x1], 1 }
 0x62f   :  { %2226 = vsyncpa [#allocation7], 1 }
 0x630   :  { %2227 = vsyncpa [#allocation10], 1 }
 0x631   :  { %2228 = vsyncpa [#allocation13], 1 }

</bundles_post_ra>
